<compile_context>
chip_gen: v6e
topology: v6e:2x2x1
jax: 0.10.0
libtpu: 0.0.40
codegen_flags: <defaults>
</compile_context>

<pallas_src>
import jax
import jax.numpy as jnp
from jax.experimental import pallas as pl
from jax.experimental.pallas import tpu as pltpu


F_PAD = 128      # conv feature channels, padded to full lane width
M_PAD = 128      # support vectors, padded to full lane width
CLS_PAD = 128    # classifier logits, padded to full lane width
LAB_PAD = 128    # lane-dense label output block


# ---------------------------------------------------------------------------
# Pallas kernel factory: fused conv + ReLU + GAP (accumulated over row tiles)
# + OneClassSVM RBF decision + classifier head + outlier masking.
# ---------------------------------------------------------------------------
def _make_kernel(K, C, TH, W, HW):
    inv_hw = 1.0 / float(HW)          # static: baked into the finalize phase

    def kernel(x_ref, wconv_ref, bconv_ref, svt_ref, sqsv_ref, dual_ref,
               wcls_ref, bcls_ref, scal_ref, preds_ref, labels_ref, acc_ref):
        h = pl.program_id(1)
        # Scalars read once, up front (SMEM).
        neg_gamma = scal_ref[0]
        rho = scal_ref[1]

        @pl.when(h == 0)
        def _init():
            acc_ref[...] = jnp.zeros_like(acc_ref)

        # ---- in-kernel im2col conv on this padded row tile -------------------
        # x: (TH + K - 1, W + K - 1, C) bf16 ; per-tap contraction over C.
        x = x_ref[...][0]
        w_all = wconv_ref[...]                                   # (K*K, C, F_PAD) bf16
        conv = jnp.zeros((TH, W, F_PAD), jnp.float32)
        for t in range(K * K):
            ky, kx = t // K, t % K
            tap = x[ky:ky + TH, kx:kx + W, :]                    # (TH, W, C) bf16
            conv += jnp.einsum('hwc,cf->hwf', tap, w_all[t],
                               preferred_element_type=jnp.float32)
        conv = jnp.maximum(conv + bconv_ref[...], 0.0)           # bias + ReLU (f32 VPU)
        # Partial GAP sum for this row tile -> accumulate.
        acc_ref[...] += jnp.sum(jnp.sum(conv, axis=0), axis=0, keepdims=True)

        # ---- finalize on the last row tile -----------------------------------
        @pl.when(h == pl.num_programs(1) - 1)
        def _finalize():
            feats = acc_ref[...] * inv_hw                        # (1, F_PAD) f32 (GAP)
            feats_bf = feats.astype(jnp.bfloat16)

            # OneClassSVM RBF decision. Padded SV columns have dual == 0 and
            # sq_sv == 0, so they contribute nothing.
            sq_f = jnp.sum(feats * feats, axis=-1, keepdims=True)        # (1, 1)
            cross = jnp.dot(feats_bf, svt_ref[...],
                            preferred_element_type=jnp.float32)          # (1, M_PAD)
            d2 = jnp.maximum(sq_f + sqsv_ref[...] - 2.0 * cross, 0.0)    # clamp
            kern = jnp.exp(neg_gamma * d2)
            decision = jnp.sum(kern * dual_ref[...], axis=-1,
                               keepdims=True) - rho                      # (1, 1)
            # NOTE: decision == 0 maps to outlier; sklearn's sign(0) == 0 differs.
            is_inlier = decision > 0.0

            # Classifier head (the original model's final Linear on features).
            logits = jnp.dot(feats_bf, wcls_ref[...],
                             preferred_element_type=jnp.float32) + bcls_ref[...]

            preds = jnp.where(is_inlier, logits, 0.0)                    # (1, CLS_PAD)
            labels = jnp.where(is_inlier,
                               jnp.ones((1, LAB_PAD), jnp.float32),
                               -jnp.ones((1, LAB_PAD), jnp.float32))
            preds_ref[...] = preds[None]                                 # (1, 1, CLS_PAD)
            labels_ref[...] = labels[None]                               # (1, 1, LAB_PAD)

    return kernel


# ---------------------------------------------------------------------------
# Wrapper: layout packing + pallas_call with a (batch, row-tile) grid.
# ---------------------------------------------------------------------------
def svm_outlier_forward(x_nchw, params):
    """x_nchw: (B, Cin, H, W) float32. Returns (preds (B, num_classes), labels (B, 1))."""
    B, Cin, H, W = x_nchw.shape
    K = params['K']
    num_classes = params['num_classes']
    pad = K // 2
    Wp = W + 2 * pad

    # NCHW -> NHWC, zero 'same' padding, bf16 for the MXU (f32 accumulation in-kernel).
    x_nhwc = jnp.transpose(x_nchw, (0, 2, 3, 1)).astype(jnp.bfloat16)
    xp = jnp.pad(x_nhwc, ((0, 0), (pad, pad), (pad, pad), (0, 0)))      # (B, Hp, Wp, C)

    # Row tiles with a (K-1)-row halo duplicated per tile so the second grid
    # axis is a pure 'arbitrary' GAP-reduction axis (bounded VMEM per step).
    TH = 8 if H % 8 == 0 else H
    n_rt = H // TH
    THp = TH + 2 * pad
    row_tiles = [xp[:, r * TH:r * TH + THp] for r in range(n_rt)]
    x_tiles = jnp.stack(row_tiles, axis=1).reshape(B * n_rt, THp, Wp, Cin)

    kernel = _make_kernel(K, Cin, TH, W, H * W)

    const2 = lambda b, h: (0, 0)
    const3 = lambda b, h: (0, 0, 0)

    grid_spec = pltpu.PrefetchScalarGridSpec(
        num_scalar_prefetch=0,
        grid=(B, n_rt),
        in_specs=[
            pl.BlockSpec((1, THp, Wp, Cin), lambda b, h: (b * n_rt + h, 0, 0, 0)),
            pl.BlockSpec((K * K, Cin, F_PAD), const3),    # conv weight (per tap)
            pl.BlockSpec((1, F_PAD), const2),             # conv bias
            pl.BlockSpec((F_PAD, M_PAD), const2),         # support vectors, pre-transposed
            pl.BlockSpec((1, M_PAD), const2),             # precomputed ||sv||^2
            pl.BlockSpec((1, M_PAD), const2),             # dual coefficients
            pl.BlockSpec((F_PAD, CLS_PAD), const2),       # classifier weight
            pl.BlockSpec((1, CLS_PAD), const2),           # classifier bias
            pl.BlockSpec(memory_space=pltpu.MemorySpace.SMEM),   # [-gamma, rho]
        ],
        out_specs=(
            pl.BlockSpec((1, 1, CLS_PAD), lambda b, h: (b, 0, 0)),
            pl.BlockSpec((1, 1, LAB_PAD), lambda b, h: (b, 0, 0)),
        ),
        scratch_shapes=[pltpu.VMEM((1, F_PAD), jnp.float32)],   # GAP accumulator
    )

    preds_pad, labels_pad = pl.pallas_call(
        kernel,
        grid_spec=grid_spec,
        out_shape=(
            jax.ShapeDtypeStruct((B, 1, CLS_PAD), jnp.float32),
            jax.ShapeDtypeStruct((B, 1, LAB_PAD), jnp.float32),
        ),
        compiler_params=pltpu.CompilerParams(
            dimension_semantics=("parallel", "arbitrary"),
            vmem_limit_bytes=32 * 1024 * 1024,
        ),
    )(
        x_tiles,
        params['wconv_p'], params['bconv_p'],
        params['svt_p'], params['sqsv_p'], params['dual_p'],
        params['wcls_p'], params['bcls_p'],
        params['scalars'],
    )

    # Slice the lane-padded outputs back to their logical shapes.
    preds = preds_pad[:, 0, :num_classes]
    labels = labels_pad[:, 0, :1]
    return preds, labels


# ---------------------------------------------------------------------------
# Deterministic synthetic parameters (no checkpoint / no SVM .fit here),
# packed into lane-padded device layouts.
# ---------------------------------------------------------------------------
def make_params(key, Cin=4, K=3, F=16, num_classes=10, M=8):
    k1, k2, k3, k4, k5, k6 = jax.random.split(key, 6)
    # Torch-style conv weight (F, Cin, K, K) -> per-tap layout (K*K, Cin, F),
    # tap order (ky, kx), contraction over Cin (matches the kernel's tap loop).
    wconv = 0.2 * jax.random.normal(k1, (F, Cin, K, K), dtype=jnp.float32)
    wconv_taps = jnp.transpose(wconv, (2, 3, 1, 0)).reshape(K * K, Cin, F)
    bconv = 0.05 * jax.random.normal(k2, (1, F), dtype=jnp.float32)
    wcls = 0.2 * jax.random.normal(k3, (F, num_classes), dtype=jnp.float32)
    bcls = 0.05 * jax.random.normal(k4, (1, num_classes), dtype=jnp.float32)

    # TODO(synk): OneClassSVM training (DataLoader loop + libsvm .fit) has no
    # Pallas equivalent; support vectors / dual coefficients / rho are synthesized.
    sv = 0.1 * jax.random.normal(k5, (M, F), dtype=jnp.float32)
    dual = jax.random.uniform(k6, (M, 1), dtype=jnp.float32, minval=0.1, maxval=1.0)
    gamma = 1.0 / F                              # sklearn gamma='auto' = 1/n_features
    rho = 0.5 * jnp.sum(dual)                    # stays on-device (no host sync)

    # Lane-padded packing (zero padding never changes the math).
    wconv_p = (jnp.zeros((K * K, Cin, F_PAD), jnp.float32)
               .at[:, :, :F].set(wconv_taps).astype(jnp.bfloat16))
    bconv_p = jnp.zeros((1, F_PAD), jnp.float32).at[:, :F].set(bconv)
    svt_p = (jnp.zeros((F_PAD, M_PAD), jnp.float32)
             .at[:F, :M].set(sv.T).astype(jnp.bfloat16))
    sqsv_p = jnp.zeros((1, M_PAD), jnp.float32).at[0, :M].set(jnp.sum(sv * sv, axis=-1))
    dual_p = jnp.zeros((1, M_PAD), jnp.float32).at[0, :M].set(dual[:, 0])
    wcls_p = (jnp.zeros((F_PAD, CLS_PAD), jnp.float32)
              .at[:F, :num_classes].set(wcls).astype(jnp.bfloat16))
    bcls_p = jnp.zeros((1, CLS_PAD), jnp.float32).at[:, :num_classes].set(bcls)
    scalars = jnp.array([-gamma, 0.0], jnp.float32).at[1].set(rho)   # SMEM scalars

    return dict(K=K, num_classes=num_classes,
                wconv_p=wconv_p, bconv_p=bconv_p, svt_p=svt_p, sqsv_p=sqsv_p,
                dual_p=dual_p, wcls_p=wcls_p, bcls_p=bcls_p, scalars=scalars)


# ---------------------------------------------------------------------------
# Pure-JAX f32 reference (uses the same padded params) for a sanity check.
# ---------------------------------------------------------------------------
def reference_forward(x_nchw, params):
    K = params['K']
    nc = params['num_classes']
    pad = K // 2
    x = jnp.transpose(x_nchw, (0, 2, 3, 1)).astype(jnp.float32)
    B, H, W, C = x.shape
    xp = jnp.pad(x, ((0, 0), (pad, pad), (pad, pad), (0, 0)))
    w = params['wconv_p'].astype(jnp.float32)
    conv = jnp.zeros((B, H, W, F_PAD), jnp.float32)
    for t in range(K * K):
        ky, kx = t // K, t % K
        conv += jnp.einsum('bhwc,cf->bhwf', xp[:, ky:ky + H, kx:kx + W, :], w[t])
    conv = jnp.maximum(conv + params['bconv_p'], 0.0)
    feats = jnp.mean(conv, axis=(1, 2))
    svt = params['svt_p'].astype(jnp.float32)
    sq_f = jnp.sum(feats * feats, axis=-1, keepdims=True)
    d2 = jnp.maximum(sq_f + params['sqsv_p'] - 2.0 * (feats @ svt), 0.0)
    neg_gamma, rho = params['scalars'][0], params['scalars'][1]
    decision = jnp.sum(jnp.exp(neg_gamma * d2) * params['dual_p'], axis=-1,
                       keepdims=True) - rho
    labels = jnp.where(decision > 0.0, 1.0, -1.0)
    logits = feats @ params['wcls_p'].astype(jnp.float32) + params['bcls_p']
    preds = jnp.where(labels > 0.0, logits, 0.0)
    return preds[:, :nc], labels


if __name__ == "__main__":
    key = jax.random.PRNGKey(0)
    kx, kp = jax.random.split(key)

    # Small example input, NCHW like the PyTorch module would receive.
    x = jax.random.normal(kx, (2, 4, 16, 16), dtype=jnp.float32)
    params = make_params(kp, Cin=4, K=3, F=16, num_classes=10, M=8)

    preds, labels = svm_outlier_forward(x, params)
    preds = jax.block_until_ready(preds)
    labels = jax.block_until_ready(labels)

    assert preds.shape == (2, 10) and labels.shape == (2, 1)
    # Rows flagged as outliers (-1) must be exactly zero.
    outlier_rows = (labels[:, 0] == -1.0)
    assert bool(jnp.all(jnp.where(outlier_rows[:, None], preds == 0.0, True)))

    # Loose-tolerance check against the pure-JAX f32 reference (the kernel uses
    # bf16 MXU inputs with f32 accumulation).
    ref_preds, ref_labels = reference_forward(x, params)
    assert bool(jnp.all(ref_labels == labels))
    assert bool(jnp.allclose(preds, ref_preds, atol=3e-2, rtol=3e-2))

    print("KERNEL_OK")
</pallas_src>

<mosaic_0001>
module attributes {stable_mosaic.version = 11 : i64} {
  func.func @kernel(%arg0: i32, %arg1: i32, %arg2: memref<1x10x18x4xbf16, #tpu.memory_space<vmem>>, %arg3: memref<9x4x128xbf16, #tpu.memory_space<vmem>>, %arg4: memref<1x128xf32, #tpu.memory_space<vmem>>, %arg5: memref<128x128xbf16, #tpu.memory_space<vmem>>, %arg6: memref<1x128xf32, #tpu.memory_space<vmem>>, %arg7: memref<1x128xf32, #tpu.memory_space<vmem>>, %arg8: memref<128x128xbf16, #tpu.memory_space<vmem>>, %arg9: memref<1x128xf32, #tpu.memory_space<vmem>>, %arg10: memref<2xf32, #tpu.memory_space<smem>>, %arg11: memref<1x1x128xf32, #tpu.memory_space<vmem>>, %arg12: memref<1x1x128xf32, #tpu.memory_space<vmem>>, %arg13: memref<1x128xf32, #tpu.memory_space<vmem>>) attributes {dimension_semantics = [#tpu.dimension_semantics<parallel>, #tpu.dimension_semantics<arbitrary>], iteration_bounds = array<i64: 2, 2>, scalar_prefetch = 0 : i64, scratch_operands = 1 : i64, tpu.core_type = #tpu.core_type<tc>, window_params = [{transform_indices = @transform_0, window_bounds = array<i64: 1, 10, 18, 4>}, {pipeline_mode = #tpu.pipeline_mode<synchronous>, transform_indices = @transform_1, window_bounds = array<i64: 9, 4, 128>}, {pipeline_mode = #tpu.pipeline_mode<synchronous>, transform_indices = @transform_2, window_bounds = array<i64: 1, 128>}, {pipeline_mode = #tpu.pipeline_mode<synchronous>, transform_indices = @transform_3, window_bounds = array<i64: 128, 128>}, {pipeline_mode = #tpu.pipeline_mode<synchronous>, transform_indices = @transform_4, window_bounds = array<i64: 1, 128>}, {pipeline_mode = #tpu.pipeline_mode<synchronous>, transform_indices = @transform_5, window_bounds = array<i64: 1, 128>}, {pipeline_mode = #tpu.pipeline_mode<synchronous>, transform_indices = @transform_6, window_bounds = array<i64: 128, 128>}, {pipeline_mode = #tpu.pipeline_mode<synchronous>, transform_indices = @transform_7, window_bounds = array<i64: 1, 128>}, {transform_indices = @transform_8, window_bounds = array<i64: 2>}, {transform_indices = @transform_9, window_bounds = array<i64: 1, 1, 128>}, {transform_indices = @transform_10, window_bounds = array<i64: 1, 1, 128>}]} {
    %c0 = arith.constant 0 : index
    %0 = memref.load %arg10[%c0] : memref<2xf32, #tpu.memory_space<smem>>
    %c1 = arith.constant 1 : index
    %1 = memref.load %arg10[%c1] : memref<2xf32, #tpu.memory_space<smem>>
    %c0_i32 = arith.constant 0 : i32
    %2 = arith.cmpi eq, %arg1, %c0_i32 : i32
    %3 = arith.extui %2 : i1 to i32
    %c0_i32_0 = arith.constant 0 : i32
    %4 = arith.cmpi ne, %3, %c0_i32_0 : i32
    scf.if %4 {
      %cst_27 = arith.constant 0.000000e+00 : f32
      %69 = vector.broadcast %cst_27 : f32 to vector<1x128xf32>
      %c0_28 = arith.constant 0 : index
      %c0_29 = arith.constant 0 : index
      %70 = vector.load %arg13[%c0_28, %c0_29] : memref<1x128xf32, #tpu.memory_space<vmem>>, vector<1x128xf32>
      tpu.vector_store %arg13[%c0_28, %c0_29], %69 {strides = array<i32>} : memref<1x128xf32, #tpu.memory_space<vmem>>, vector<1x128xf32>,
    } else {
    }
    %c0_1 = arith.constant 0 : index
    %c0_2 = arith.constant 0 : index
    %c0_3 = arith.constant 0 : index
    %c0_4 = arith.constant 0 : index
    %5 = vector.load %arg2[%c0_1, %c0_2, %c0_3, %c0_4] : memref<1x10x18x4xbf16, #tpu.memory_space<vmem>>, vector<1x10x18x4xbf16>
    %6 = vector.shape_cast %5 : vector<1x10x18x4xbf16> to vector<10x18x4xbf16>
    %c0_5 = arith.constant 0 : index
    %c0_6 = arith.constant 0 : index
    %c0_7 = arith.constant 0 : index
    %7 = vector.load %arg3[%c0_5, %c0_6, %c0_7] : memref<9x4x128xbf16, #tpu.memory_space<vmem>>, vector<9x4x128xbf16>
    %cst = arith.constant 0.000000e+00 : f32
    %8 = vector.broadcast %cst : f32 to vector<8x16x128xf32>
    %9 = vector.extract_strided_slice %6 {offsets = [0, 0, 0], sizes = [8, 16, 4], strides = [1, 1, 1]} : vector<10x18x4xbf16> to vector<8x16x4xbf16>
    %10 = vector.extract_strided_slice %7 {offsets = [0, 0, 0], sizes = [1, 4, 128], strides = [1, 1, 1]} : vector<9x4x128xbf16> to vector<1x4x128xbf16>
    %11 = vector.shape_cast %10 : vector<1x4x128xbf16> to vector<4x128xbf16>
    "tpu.trace_start"() <{level = 10 : i32, message = "hwc,cf->hwf"}> : () -> ()
    %cst_8 = arith.constant dense<0.000000e+00> : vector<8x16x128xf32>
    %12 = tpu.matmul %9, %11, %cst_8 {dimension_numbers = #tpu.dot_dimension_numbers<[2], [0], [0, 1], [1], [0, 0, 0, 1, 1, 1], [], []>} : vector<8x16x4xbf16>, vector<4x128xbf16>, vector<8x16x128xf32> -> vector<8x16x128xf32>
    "tpu.trace_stop"() : () -> ()
    %13 = arith.addf %8, %12 : vector<8x16x128xf32>
    %14 = vector.extract_strided_slice %6 {offsets = [0, 1, 0], sizes = [8, 16, 4], strides = [1, 1, 1]} : vector<10x18x4xbf16> to vector<8x16x4xbf16>
    %15 = vector.extract_strided_slice %7 {offsets = [1, 0, 0], sizes = [1, 4, 128], strides = [1, 1, 1]} : vector<9x4x128xbf16> to vector<1x4x128xbf16>
    %16 = vector.shape_cast %15 : vector<1x4x128xbf16> to vector<4x128xbf16>
    "tpu.trace_start"() <{level = 10 : i32, message = "hwc,cf->hwf"}> : () -> ()
    %cst_9 = arith.constant dense<0.000000e+00> : vector<8x16x128xf32>
    %17 = tpu.matmul %14, %16, %cst_9 {dimension_numbers = #tpu.dot_dimension_numbers<[2], [0], [0, 1], [1], [0, 0, 0, 1, 1, 1], [], []>} : vector<8x16x4xbf16>, vector<4x128xbf16>, vector<8x16x128xf32> -> vector<8x16x128xf32>
    "tpu.trace_stop"() : () -> ()
    %18 = arith.addf %13, %17 : vector<8x16x128xf32>
    %19 = vector.extract_strided_slice %6 {offsets = [0, 2, 0], sizes = [8, 16, 4], strides = [1, 1, 1]} : vector<10x18x4xbf16> to vector<8x16x4xbf16>
    %20 = vector.extract_strided_slice %7 {offsets = [2, 0, 0], sizes = [1, 4, 128], strides = [1, 1, 1]} : vector<9x4x128xbf16> to vector<1x4x128xbf16>
    %21 = vector.shape_cast %20 : vector<1x4x128xbf16> to vector<4x128xbf16>
    "tpu.trace_start"() <{level = 10 : i32, message = "hwc,cf->hwf"}> : () -> ()
    %cst_10 = arith.constant dense<0.000000e+00> : vector<8x16x128xf32>
    %22 = tpu.matmul %19, %21, %cst_10 {dimension_numbers = #tpu.dot_dimension_numbers<[2], [0], [0, 1], [1], [0, 0, 0, 1, 1, 1], [], []>} : vector<8x16x4xbf16>, vector<4x128xbf16>, vector<8x16x128xf32> -> vector<8x16x128xf32>
    "tpu.trace_stop"() : () -> ()
    %23 = arith.addf %18, %22 : vector<8x16x128xf32>
    %24 = vector.extract_strided_slice %6 {offsets = [1, 0, 0], sizes = [8, 16, 4], strides = [1, 1, 1]} : vector<10x18x4xbf16> to vector<8x16x4xbf16>
    %25 = vector.extract_strided_slice %7 {offsets = [3, 0, 0], sizes = [1, 4, 128], strides = [1, 1, 1]} : vector<9x4x128xbf16> to vector<1x4x128xbf16>
    %26 = vector.shape_cast %25 : vector<1x4x128xbf16> to vector<4x128xbf16>
    "tpu.trace_start"() <{level = 10 : i32, message = "hwc,cf->hwf"}> : () -> ()
    %cst_11 = arith.constant dense<0.000000e+00> : vector<8x16x128xf32>
    %27 = tpu.matmul %24, %26, %cst_11 {dimension_numbers = #tpu.dot_dimension_numbers<[2], [0], [0, 1], [1], [0, 0, 0, 1, 1, 1], [], []>} : vector<8x16x4xbf16>, vector<4x128xbf16>, vector<8x16x128xf32> -> vector<8x16x128xf32>
    "tpu.trace_stop"() : () -> ()
    %28 = arith.addf %23, %27 : vector<8x16x128xf32>
    %29 = vector.extract_strided_slice %6 {offsets = [1, 1, 0], sizes = [8, 16, 4], strides = [1, 1, 1]} : vector<10x18x4xbf16> to vector<8x16x4xbf16>
    %30 = vector.extract_strided_slice %7 {offsets = [4, 0, 0], sizes = [1, 4, 128], strides = [1, 1, 1]} : vector<9x4x128xbf16> to vector<1x4x128xbf16>
    %31 = vector.shape_cast %30 : vector<1x4x128xbf16> to vector<4x128xbf16>
    "tpu.trace_start"() <{level = 10 : i32, message = "hwc,cf->hwf"}> : () -> ()
    %cst_12 = arith.constant dense<0.000000e+00> : vector<8x16x128xf32>
    %32 = tpu.matmul %29, %31, %cst_12 {dimension_numbers = #tpu.dot_dimension_numbers<[2], [0], [0, 1], [1], [0, 0, 0, 1, 1, 1], [], []>} : vector<8x16x4xbf16>, vector<4x128xbf16>, vector<8x16x128xf32> -> vector<8x16x128xf32>
    "tpu.trace_stop"() : () -> ()
    %33 = arith.addf %28, %32 : vector<8x16x128xf32>
    %34 = vector.extract_strided_slice %6 {offsets = [1, 2, 0], sizes = [8, 16, 4], strides = [1, 1, 1]} : vector<10x18x4xbf16> to vector<8x16x4xbf16>
    %35 = vector.extract_strided_slice %7 {offsets = [5, 0, 0], sizes = [1, 4, 128], strides = [1, 1, 1]} : vector<9x4x128xbf16> to vector<1x4x128xbf16>
    %36 = vector.shape_cast %35 : vector<1x4x128xbf16> to vector<4x128xbf16>
    "tpu.trace_start"() <{level = 10 : i32, message = "hwc,cf->hwf"}> : () -> ()
    %cst_13 = arith.constant dense<0.000000e+00> : vector<8x16x128xf32>
    %37 = tpu.matmul %34, %36, %cst_13 {dimension_numbers = #tpu.dot_dimension_numbers<[2], [0], [0, 1], [1], [0, 0, 0, 1, 1, 1], [], []>} : vector<8x16x4xbf16>, vector<4x128xbf16>, vector<8x16x128xf32> -> vector<8x16x128xf32>
    "tpu.trace_stop"() : () -> ()
    %38 = arith.addf %33, %37 : vector<8x16x128xf32>
    %39 = vector.extract_strided_slice %6 {offsets = [2, 0, 0], sizes = [8, 16, 4], strides = [1, 1, 1]} : vector<10x18x4xbf16> to vector<8x16x4xbf16>
    %40 = vector.extract_strided_slice %7 {offsets = [6, 0, 0], sizes = [1, 4, 128], strides = [1, 1, 1]} : vector<9x4x128xbf16> to vector<1x4x128xbf16>
    %41 = vector.shape_cast %40 : vector<1x4x128xbf16> to vector<4x128xbf16>
    "tpu.trace_start"() <{level = 10 : i32, message = "hwc,cf->hwf"}> : () -> ()
    %cst_14 = arith.constant dense<0.000000e+00> : vector<8x16x128xf32>
    %42 = tpu.matmul %39, %41, %cst_14 {dimension_numbers = #tpu.dot_dimension_numbers<[2], [0], [0, 1], [1], [0, 0, 0, 1, 1, 1], [], []>} : vector<8x16x4xbf16>, vector<4x128xbf16>, vector<8x16x128xf32> -> vector<8x16x128xf32>
    "tpu.trace_stop"() : () -> ()
    %43 = arith.addf %38, %42 : vector<8x16x128xf32>
    %44 = vector.extract_strided_slice %6 {offsets = [2, 1, 0], sizes = [8, 16, 4], strides = [1, 1, 1]} : vector<10x18x4xbf16> to vector<8x16x4xbf16>
    %45 = vector.extract_strided_slice %7 {offsets = [7, 0, 0], sizes = [1, 4, 128], strides = [1, 1, 1]} : vector<9x4x128xbf16> to vector<1x4x128xbf16>
    %46 = vector.shape_cast %45 : vector<1x4x128xbf16> to vector<4x128xbf16>
    "tpu.trace_start"() <{level = 10 : i32, message = "hwc,cf->hwf"}> : () -> ()
    %cst_15 = arith.constant dense<0.000000e+00> : vector<8x16x128xf32>
    %47 = tpu.matmul %44, %46, %cst_15 {dimension_numbers = #tpu.dot_dimension_numbers<[2], [0], [0, 1], [1], [0, 0, 0, 1, 1, 1], [], []>} : vector<8x16x4xbf16>, vector<4x128xbf16>, vector<8x16x128xf32> -> vector<8x16x128xf32>
    "tpu.trace_stop"() : () -> ()
    %48 = arith.addf %43, %47 : vector<8x16x128xf32>
    %49 = vector.extract_strided_slice %6 {offsets = [2, 2, 0], sizes = [8, 16, 4], strides = [1, 1, 1]} : vector<10x18x4xbf16> to vector<8x16x4xbf16>
    %50 = vector.extract_strided_slice %7 {offsets = [8, 0, 0], sizes = [1, 4, 128], strides = [1, 1, 1]} : vector<9x4x128xbf16> to vector<1x4x128xbf16>
    %51 = vector.shape_cast %50 : vector<1x4x128xbf16> to vector<4x128xbf16>
    "tpu.trace_start"() <{level = 10 : i32, message = "hwc,cf->hwf"}> : () -> ()
    %cst_16 = arith.constant dense<0.000000e+00> : vector<8x16x128xf32>
    %52 = tpu.matmul %49, %51, %cst_16 {dimension_numbers = #tpu.dot_dimension_numbers<[2], [0], [0, 1], [1], [0, 0, 0, 1, 1, 1], [], []>} : vector<8x16x4xbf16>, vector<4x128xbf16>, vector<8x16x128xf32> -> vector<8x16x128xf32>
    "tpu.trace_stop"() : () -> ()
    %53 = arith.addf %48, %52 : vector<8x16x128xf32>
    %c0_17 = arith.constant 0 : index
    %c0_18 = arith.constant 0 : index
    %54 = vector.load %arg4[%c0_17, %c0_18] : memref<1x128xf32, #tpu.memory_space<vmem>>, vector<1x128xf32>
    %55 = vector.shape_cast %54 : vector<1x128xf32> to vector<1x1x128xf32>
    %56 = vector.broadcast %55 : vector<1x1x128xf32> to vector<8x16x128xf32>
    %57 = arith.addf %53, %56 : vector<8x16x128xf32>
    %cst_19 = arith.constant 0.000000e+00 : f32
    %58 = vector.broadcast %cst_19 : f32 to vector<8x16x128xf32>
    %59 = arith.maximumf %57, %58 : vector<8x16x128xf32>
    %c0_20 = arith.constant 0 : index
    %c0_21 = arith.constant 0 : index
    %60 = vector.load %arg13[%c0_20, %c0_21] : memref<1x128xf32, #tpu.memory_space<vmem>>, vector<1x128xf32>
    %cst_22 = arith.constant dense<0.000000e+00> : vector<16x128xf32>
    %61 = vector.multi_reduction <add>, %59, %cst_22 [0] : vector<8x16x128xf32> to vector<16x128xf32>
    %cst_23 = arith.constant dense<0.000000e+00> : vector<128xf32>
    %62 = vector.multi_reduction <add>, %61, %cst_23 [0] : vector<16x128xf32> to vector<128xf32>
    %63 = vector.shape_cast %62 : vector<128xf32> to vector<1x128xf32>
    %64 = arith.addf %60, %63 : vector<1x128xf32>
    %c0_24 = arith.constant 0 : index
    %c0_25 = arith.constant 0 : index
    %65 = vector.load %arg13[%c0_24, %c0_25] : memref<1x128xf32, #tpu.memory_space<vmem>>, vector<1x128xf32>
    tpu.vector_store %arg13[%c0_24, %c0_25], %64 {strides = array<i32>} : memref<1x128xf32, #tpu.memory_space<vmem>>, vector<1x128xf32>,
    %c1_i32 = arith.constant 1 : i32
    %66 = arith.cmpi eq, %arg1, %c1_i32 : i32
    %67 = arith.extui %66 : i1 to i32
    %c0_i32_26 = arith.constant 0 : i32
    %68 = arith.cmpi ne, %67, %c0_i32_26 : i32
    scf.if %68 {
      %c0_27 = arith.constant 0 : index
      %c0_28 = arith.constant 0 : index
      %69 = vector.load %arg13[%c0_27, %c0_28] : memref<1x128xf32, #tpu.memory_space<vmem>>, vector<1x128xf32>
      %cst_29 = arith.constant 3.906250e-03 : f32
      %70 = vector.broadcast %cst_29 : f32 to vector<1x128xf32>
      %71 = arith.mulf %69, %70 : vector<1x128xf32>
      %72 = arith.truncf %71 : vector<1x128xf32> to vector<1x128xbf16>
      %73 = arith.mulf %71, %71 : vector<1x128xf32>
      %cst_30 = arith.constant dense<0.000000e+00> : vector<1xf32>
      %74 = vector.multi_reduction <add>, %73, %cst_30 [1] : vector<1x128xf32> to vector<1xf32>
      %75 = vector.shape_cast %74 : vector<1xf32> to vector<1x1xf32>
      %c0_31 = arith.constant 0 : index
      %c0_32 = arith.constant 0 : index
      %76 = vector.load %arg5[%c0_31, %c0_32] : memref<128x128xbf16, #tpu.memory_space<vmem>>, vector<128x128xbf16>
      %cst_33 = arith.constant dense<0.000000e+00> : vector<1x128xf32>
      %77 = tpu.matmul %72, %76, %cst_33 {dimension_numbers = #tpu.dot_dimension_numbers<[1], [0], [0], [1], [0, 0, 1, 1], [], []>} : vector<1x128xbf16>, vector<128x128xbf16>, vector<1x128xf32> -> vector<1x128xf32>
      %c0_34 = arith.constant 0 : index
      %c0_35 = arith.constant 0 : index
      %78 = vector.load %arg6[%c0_34, %c0_35] : memref<1x128xf32, #tpu.memory_space<vmem>>, vector<1x128xf32>
      %79 = vector.broadcast %75 : vector<1x1xf32> to vector<1x128xf32>
      %80 = arith.addf %79, %78 : vector<1x128xf32>
      %cst_36 = arith.constant 2.000000e+00 : f32
      %81 = vector.broadcast %cst_36 : f32 to vector<1x128xf32>
      %82 = arith.mulf %81, %77 : vector<1x128xf32>
      %83 = arith.subf %80, %82 : vector<1x128xf32>
      %cst_37 = arith.constant 0.000000e+00 : f32
      %84 = vector.broadcast %cst_37 : f32 to vector<1x128xf32>
      %85 = arith.maximumf %83, %84 : vector<1x128xf32>
      %86 = vector.broadcast %0 : f32 to vector<1x128xf32>
      %87 = arith.mulf %86, %85 : vector<1x128xf32>
      %88 = math.exp %87 : vector<1x128xf32>
      %c0_38 = arith.constant 0 : index
      %c0_39 = arith.constant 0 : index
      %89 = vector.load %arg7[%c0_38, %c0_39] : memref<1x128xf32, #tpu.memory_space<vmem>>, vector<1x128xf32>
      %90 = arith.mulf %88, %89 : vector<1x128xf32>
      %cst_40 = arith.constant dense<0.000000e+00> : vector<1xf32>
      %91 = vector.multi_reduction <add>, %90, %cst_40 [1] : vector<1x128xf32> to vector<1xf32>
      %92 = vector.shape_cast %91 : vector<1xf32> to vector<1x1xf32>
      %93 = vector.broadcast %1 : f32 to vector<1x1xf32>
      %94 = arith.subf %92, %93 : vector<1x1xf32>
      %cst_41 = arith.constant 0.000000e+00 : f32
      %95 = vector.broadcast %cst_41 : f32 to vector<1x1xf32>
      %96 = arith.cmpf ogt, %94, %95 : vector<1x1xf32>
      %c0_42 = arith.constant 0 : index
      %c0_43 = arith.constant 0 : index
      %97 = vector.load %arg8[%c0_42, %c0_43] : memref<128x128xbf16, #tpu.memory_space<vmem>>, vector<128x128xbf16>
      %cst_44 = arith.constant dense<0.000000e+00> : vector<1x128xf32>
      %98 = tpu.matmul %72, %97, %cst_44 {dimension_numbers = #tpu.dot_dimension_numbers<[1], [0], [0], [1], [0, 0, 1, 1], [], []>} : vector<1x128xbf16>, vector<128x128xbf16>, vector<1x128xf32> -> vector<1x128xf32>
      %c0_45 = arith.constant 0 : index
      %c0_46 = arith.constant 0 : index
      %99 = vector.load %arg9[%c0_45, %c0_46] : memref<1x128xf32, #tpu.memory_space<vmem>>, vector<1x128xf32>
      %100 = arith.addf %98, %99 : vector<1x128xf32>
      %cst_47 = arith.constant 0.000000e+00 : f32
      %101 = vector.shape_cast %96 : vector<1x1xi1> to vector<1x1xi1>
      %102 = vector.broadcast %101 : vector<1x1xi1> to vector<1x128xi1>
      %103 = vector.broadcast %cst_47 : f32 to vector<1x128xf32>
      %104 = arith.select %102, %100, %103 : vector<1x128xi1>, vector<1x128xf32>
      %cst_48 = arith.constant 1.000000e+00 : f32
      %105 = vector.broadcast %cst_48 : f32 to vector<1x128xf32>
      %cst_49 = arith.constant 1.000000e+00 : f32
      %106 = vector.broadcast %cst_49 : f32 to vector<1x128xf32>
      %cst_50 = arith.constant 0.000000e+00 : f32
      %107 = vector.broadcast %cst_50 : f32 to vector<1x128xf32>
      %108 = arith.subf %107, %106 : vector<1x128xf32>
      %109 = vector.shape_cast %96 : vector<1x1xi1> to vector<1x1xi1>
      %110 = vector.broadcast %109 : vector<1x1xi1> to vector<1x128xi1>
      %111 = arith.select %110, %105, %108 : vector<1x128xi1>, vector<1x128xf32>
      %112 = vector.shape_cast %104 : vector<1x128xf32> to vector<1x1x128xf32>
      %c0_51 = arith.constant 0 : index
      %c0_52 = arith.constant 0 : index
      %c0_53 = arith.constant 0 : index
      %113 = vector.load %arg11[%c0_51, %c0_52, %c0_53] : memref<1x1x128xf32, #tpu.memory_space<vmem>>, vector<1x1x128xf32>
      tpu.vector_store %arg11[%c0_51, %c0_52, %c0_53], %112 {strides = array<i32>} : memref<1x1x128xf32, #tpu.memory_space<vmem>>, vector<1x1x128xf32>,
      %114 = vector.shape_cast %111 : vector<1x128xf32> to vector<1x1x128xf32>
      %c0_54 = arith.constant 0 : index
      %c0_55 = arith.constant 0 : index
      %c0_56 = arith.constant 0 : index
      %115 = vector.load %arg12[%c0_54, %c0_55, %c0_56] : memref<1x1x128xf32, #tpu.memory_space<vmem>>, vector<1x1x128xf32>
      tpu.vector_store %arg12[%c0_54, %c0_55, %c0_56], %114 {strides = array<i32>} : memref<1x1x128xf32, #tpu.memory_space<vmem>>, vector<1x1x128xf32>,
    } else {
    }
    return
  }
  func.func @transform_0(%arg0: i32, %arg1: i32) -> (i32, i32, i32, i32) {
    %c2_i32 = arith.constant 2 : i32
    %0 = arith.muli %arg0, %c2_i32 : i32
    %1 = arith.addi %0, %arg1 : i32
    %c0_i32 = arith.constant 0 : i32
    %c0_i32_0 = arith.constant 0 : i32
    %c0_i32_1 = arith.constant 0 : i32
    %c0_i32_2 = arith.constant 0 : i32
    return %1, %c0_i32, %c0_i32_0, %c0_i32_1 : i32, i32, i32, i32
  }
  func.func @transform_1(%arg0: i32, %arg1: i32) -> (i32, i32, i32) {
    %c0_i32 = arith.constant 0 : i32
    %c0_i32_0 = arith.constant 0 : i32
    %c0_i32_1 = arith.constant 0 : i32
    %c0_i32_2 = arith.constant 0 : i32
    return %c0_i32, %c0_i32_0, %c0_i32_1 : i32, i32, i32
  }
  func.func @transform_2(%arg0: i32, %arg1: i32) -> (i32, i32) {
    %c0_i32 = arith.constant 0 : i32
    %c0_i32_0 = arith.constant 0 : i32
    %c0_i32_1 = arith.constant 0 : i32
    return %c0_i32, %c0_i32_0 : i32, i32
  }
  func.func @transform_3(%arg0: i32, %arg1: i32) -> (i32, i32) {
    %c0_i32 = arith.constant 0 : i32
    %c0_i32_0 = arith.constant 0 : i32
    %c0_i32_1 = arith.constant 0 : i32
    return %c0_i32, %c0_i32_0 : i32, i32
  }
  func.func @transform_4(%arg0: i32, %arg1: i32) -> (i32, i32) {
    %c0_i32 = arith.constant 0 : i32
    %c0_i32_0 = arith.constant 0 : i32
    %c0_i32_1 = arith.constant 0 : i32
    return %c0_i32, %c0_i32_0 : i32, i32
  }
  func.func @transform_5(%arg0: i32, %arg1: i32) -> (i32, i32) {
    %c0_i32 = arith.constant 0 : i32
    %c0_i32_0 = arith.constant 0 : i32
    %c0_i32_1 = arith.constant 0 : i32
    return %c0_i32, %c0_i32_0 : i32, i32
  }
  func.func @transform_6(%arg0: i32, %arg1: i32) -> (i32, i32) {
    %c0_i32 = arith.constant 0 : i32
    %c0_i32_0 = arith.constant 0 : i32
    %c0_i32_1 = arith.constant 0 : i32
    return %c0_i32, %c0_i32_0 : i32, i32
  }
  func.func @transform_7(%arg0: i32, %arg1: i32) -> (i32, i32) {
    %c0_i32 = arith.constant 0 : i32
    %c0_i32_0 = arith.constant 0 : i32
    %c0_i32_1 = arith.constant 0 : i32
    return %c0_i32, %c0_i32_0 : i32, i32
  }
  func.func @transform_8(%arg0: i32, %arg1: i32) -> i32 {
    %c0_i32 = arith.constant 0 : i32
    %c0_i32_0 = arith.constant 0 : i32
    return %c0_i32 : i32
  }
  func.func @transform_9(%arg0: i32, %arg1: i32) -> (i32, i32, i32) {
    %c0_i32 = arith.constant 0 : i32
    %c0_i32_0 = arith.constant 0 : i32
    %c0_i32_1 = arith.constant 0 : i32
    return %arg0, %c0_i32, %c0_i32_0 : i32, i32, i32
  }
  func.func @transform_10(%arg0: i32, %arg1: i32) -> (i32, i32, i32) {
    %c0_i32 = arith.constant 0 : i32
    %c0_i32_0 = arith.constant 0 : i32
    %c0_i32_1 = arith.constant 0 : i32
    return %arg0, %c0_i32, %c0_i32_0 : i32, i32, i32
  }
}

</mosaic_0001>

<bundles_post_ra>
// kernel: tpu_custom_call.1
= control target key start
LH: loop header
LB: loop body
LE: loop exit
PB: predicated region body
PF: predicated region fallthrough
CT: control target
= control target key end

     0   :  { %s4106_s0 = inlined_call_operand.vmem [shape: bf16[4,10,18,4], index: 0, kind: input, shape index: {}]   ;;  %s4107_s1 = inlined_call_operand.vmem [shape: bf16[9,4,128], index: 1, kind: input, shape index: {}]   ;;  %s4108_s2 = inlined_call_operand.vmem [shape: f32[1,128], index: 2, kind: input, shape index: {}]   ;;  %s4109_s3 = inlined_call_operand.vmem [shape: bf16[128,128], index: 3, kind: input, shape index: {}]   ;;  %s4110_s4 = inlined_call_operand.vmem [shape: f32[1,128], index: 4, kind: input, shape index: {}]   ;;  %s4111_s5 = inlined_call_operand.vmem [shape: f32[1,128], index: 5, kind: input, shape index: {}]   ;;  %s4112_s6 = inlined_call_operand.vmem [shape: bf16[128,128], index: 6, kind: input, shape index: {}]   ;;  %s4113_s7 = inlined_call_operand.vmem [shape: f32[1,128], index: 7, kind: input, shape index: {}]   ;;  %s4114_s8 = inlined_call_operand.vmem [shape: f32[2], index: 8, kind: input, shape index: {}]   ;;  %s4115_s9 = inlined_call_operand.hbm [shape: f32[2,1,128], index: 9, kind: output, shape index: {0}]   ;;  %s4116_s10 = inlined_call_operand.hbm [shape: f32[2,1,128], index: 10, kind: output, shape index: {1}]  }
   0x1   :  { %4122 = sst [smem:[#allocation22_spill]] %s4106_s0 }
   0x2   :  { %4123 = sst [smem:[#allocation23_spill]] %s4107_s1 }
   0x3   :  { %4124 = sst [smem:[#allocation24_spill]] %s4114_s8 }
   0x4   :  { %16 = vsyncpa [#allocation5], 0 }
   0x5   :  { %17 = vsyncpa [#allocation4], 0 }
   0x6   :  { %19 = vsyncpa [#allocation4 + $0x1], 0 }
   0x7   :  { %20 = vsyncpa [#allocation8], 0 }
   0x8   :  { %22 = vsyncpa [#allocation8 + $0x1], 0  ;;  %s3222_s13 = smov 0   ;;  %s3224_s14 = smov 0  }
   0x9   :  { %s3226_s15 = smov 0   ;;  %s3228_s16 = smov 0  }
   0xa   :  { %s3230_s17 = smov 0   ;;  %s3232_s18 = smov 0  }
   0xb   :  { %s3234_s19 = smov 0   ;;  %s3236_s20 = smov 0  }
   0xc LB: > { %4125 = sst [smem:[#allocation12_spill]] %s3150_s18  ;;  %s2437_s21 = sadd.s32 4294967295, %s3158_s20   ;;  %s3158_s20 = sphi %s3236_s20, %s28_s20   ;;  %s3154_s19 = sphi %s3234_s19, %s4158_s19   ;;  %s3150_s18 = sphi %s3232_s18, %s4157_s18   ;;  %s3146_s17 = sphi %s3230_s17, %s4156_s17   ;;  %s3142_s16 = sphi %s3228_s16, %s4155_s16   ;;  %s3138_s15 = sphi %s3226_s15, %s4161_s15   ;;  %s3134_s14 = sphi %s3224_s14, %s4160_s14   ;;  %s3130_s13 = sphi %s3222_s13, %s4159_s13  }
   0xd   : > { %4126 = sst [smem:[#allocation13_spill]] %s3154_s19  ;;  %s2438_s22 = sadd.s32 4294967294, %s3158_s20  }
   0xe   : > { %s37_s23 = sadd.s32 1, %s3150_s18  ;;  %s40_s24 = sadd.s32 1, %s3154_s19 }
   0xf   : > { %p38_p0 = scmp.ge.s32.totalorder %s37_s23, 2  ;;  %s245_s25 = sadd.s32 1, %s3138_s15 }
  0x10   : > { %p255_p1 = scmp.ne.s32.totalorder %s3138_s15, %s3134_s14  ;;  %p256_p2 = scmp.eq.s32.totalorder %s2437_s21, 3 }
  0x11   : > { %s4163_s23 = smov (%p38_p0, %s37_s23), 0  ;;  %s4165_s24 = smov (!%p38_p0, %s40_s24), %s3154_s19 }
  0x12   : > { %4127 = sst [smem:[#allocation14_spill]] %s4163_s23  ;;  %p3272_p3 = por %p256_p2, %p255_p1 }
  0x13   : > { %p261_p4 = scmp.ne.s32.totalorder %s3134_s14, %s3130_s13  ;;  %p42_p5 = scmp.ge.s32.totalorder %s4165_s24, 2 }
  0x14   : > { %p262_p6 = scmp.eq.s32.totalorder %s2438_s22, 3  ;;  %p2441_p7 = scmp.ge.s32.totalorder %s3158_s20, 1 }
  0x15   : > { %p295_p8 = scmp.lt.s32.totalorder %s3158_s20, 5  ;;  %s4167_s24 = smov (%p42_p5, %s4165_s24), 0 }
  0x16   : > { %4129 = sst [smem:[#allocation15_spill]] %s4167_s24  ;;  %p3282_p9 = por %p262_p6, %p261_p4 }
  0x17   : > { %p3286_p10 = pnand %p2441_p7, %p295_p8  ;;  %s242_s29 = ssub.s32 %s3154_s19, %s4167_s24 }
  0x18   : > { %s4130_s27 = scalar_select %p3282_p9, 1, 0 }
  0x19   : > { %p243_p11 = scmp.eq.s32.totalorder %s242_s29, 0  ;;  %p2906_p12 = pneg %p3286_p10 }
  0x1a   : > { %p3294_p13 = scmp.eq.s32.totalorder %s2437_s21, 0  ;;  %s4133_s8 = sld [smem:[#allocation24_spill]] }
  0x1b   : > { %s3302_s23 = scalar_select %p243_p11, %s3138_s15, %s245_s25  }
  0x1c   : > { %p2907_p0 = pnand %p3294_p13, %p2906_p12 }
  0x1e   : > { %p3019_p2 = pneg %p2907_p0 }
  0x20   : > { %s329_s22 = sshll.u32 %s4133_s8, 4  ;;  %s330_s22 = int_to_ptr.vmem [resolvable:$true] %s329_s22 }
  0x21   : > { %s3017_s18 = scalar_lea.vmem %s330_s22, 16  ;;  %p3025_p6 = scmp.lt.s32.totalorder %s330_s22, %s330_s22 }
  0x22   : > { %p3018_p1 = scmp.ne.s32.totalorder %s330_s22, %s3017_s18  ;;  %p3026_p7 = scmp.lt.s32.totalorder %s3017_s18, %s3017_s18 }
  0x24   : > { %p3020_p4 = pnand %p3019_p2, %p3018_p1  ;;  %p3027_p8 = por %p3026_p7, %p3025_p6 }
  0x26   : > { %p3021_p5 = pneg %p3020_p4 }
  0x28   : > { %p3028_p9 = pnand %p3027_p8, %p3021_p5 }
  0x2a   : > { %3031 = shalt.err (!%p3028_p9)
}
  0x2b   : > { %s3160_s21 = smov [#allocation3]   ;;  %354 = sbr.rel (%p3286_p10) target bundleno = 908 (0x38c), region = 56 }
  0x2c   : > { %2909 = dma.vmem_to_smem (!%p2907_p0), %s330_s22, 16, %s3160_s21, [#allocation5]  }
  0x30   : > { %3117 = dma.done.wait (%p3294_p13), [#allocation5], 16  }
  0x31   : > { %3119 = vsyncadd (%p3294_p13), [#allocation5], 4294967280 }
  0x32   : > { %360 = sfence }
  0x33   : > { %s3313_s25 = sand.u32 1, %s3134_s14   ;;  %s2446_s18 = sshll.u32 %s3146_s17, 1 }
  0x34   : > { %s399_s29 = sadd.s32 %s3142_s16, %s2446_s18  ;;  %s3317_s11 = sld [smem:[#allocation3]] }
  0x35   : > { %p400_p9 = scmp.lt.s32.totalorder %s399_s29, 3  ;;  %s3319_s28 = sld [smem:[#allocation3 + $0x1]] }
  0x36   : > { %s4134_s0 = sld [smem:[#allocation22_spill]]  ;;  %s391_s8 = scalar_lea.vmem [#allocation6], %s3313_s25 }
  0x37   : > { %s4169_s29 = smov (!%p400_p9, %s399_s29), 3  ;;  %s4120_s24 = scalar_lea.vmem [#allocation7], %s3313_s25 }
  0x38   : > { %s2897_s12 = smul.u32 120, %s4169_s29  ;;  %p2449_p10 = scmp.ne.s32.totalorder %s3142_s16, 0 }
  0x3a   : > { %413 = sbr.rel (%p2449_p10) target bundleno = 65 (0x41), region = 64 }
  0x3c   : > { %s3324_s21 = scalar_lea.vmem %s4134_s0, %s2897_s12 }
  0x3f   : > { %v3161_v0 = vmov 0.0  }
  0x40   : > { %414 = vst [vmem:[#allocation2] sm:$0x1] %v3161_v0 }
  0x41 PF: > { %s4135_s1 = sld [smem:[#allocation23_spill]]  ;;  %vm698_vm0 = vcmask 1041408   ;;  %v3333_v2 = vld [vmem:[%s3324_s21] sm:$0xf]  ;;  %v3339_v4 = vld [vmem:[%s3324_s21 + $0x4] sm:$0xf] }
  0x42   : > { %v3342_v5 = vld [vmem:[%s3324_s21 + $0x8] sm:$0x1]  ;;  %v458_v6 = vshrl.u32 %v3333_v2, 16  ;;  %vm454_vm1 = vsmask.f32 3328  ;;  %v461_v7 = vshll.u32 %v3333_v2, 16 }
  0x43   : > { %vm455_vm2 = vsmask.f32 7440  ;;  %v467_v8 = vshll.u32 %v3339_v4, 16  ;;  %v471_v10 = vshrl.u32 %v3339_v4, 16  ;;  %v477_v11 = vshll.u32 %v3342_v5, 16  ;;  %p2563_p11 = scmp.ne.s32.totalorder %s3142_s16, 1 }
  0x44   : > { %v460_v9 = vrot.slane %v458_v6, 4  ;;  %v3350_v12 = vld [vmem:[%s3324_s21 + $0x30] sm:$0xf]  ;;  %v463_v13 = vrot.slane %v461_v7, 5  ;;  %v3353_v15 = vld [vmem:[%s3324_s21 + $0x34] sm:$0xf]  ;;  %vm3372_vm4 = vmor %vm454_vm1, %vm455_vm2 }
  0x45   : > { %v469_v14 = vrot.slane %v467_v8, 5  ;;  %v3356_v16 = vld [vmem:[%s3324_s21 + $0x38] sm:$0x1]  ;;  %v473_v17 = vrot.slane %v471_v10, 4  ;;  %vm673_vm3 = vcmask 31744   ;;  %v554_v18 = vshrl.u32 %v3350_v12, 16 }
  0x46   : > { %v557_v19 = vshll.u32 %v3350_v12, 16  ;;  %v464_v21 = vor.u32 %v463_v13, %v460_v9  ;;  %v563_v22 = vshll.u32 %v3353_v15, 16  ;;  %v567_v23 = vshrl.u32 %v3353_v15, 16  ;;  %v3368_v25 = vld [vmem:[%s3324_s21 + $0xc] sm:$0xf] }
  0x47   : > { %v446_v1 = vld [vmem:[%s4135_s1 + $0x2] sm:$0x3]  ;;  %v445_v20 = vld [vmem:[%s4135_s1] sm:$0x3]  ;;  %v573_v24 = vshll.u32 %v3356_v16, 16  ;;  %v474_v27 = vor.u32 %v473_v17, %v469_v14  ;;  %v479_v28 = vrot.slane %v477_v11, 5 }
  0x48   : > { %2888 = vmatprep.subr.msk.bf16.mxu1 %vm698_vm0, %v446_v1  ;;  %2887 = vmatprep.subr.msk.bf16.mxu0 %vm698_vm0, %v446_v1  ;;  %v700_v3 = vsel %vm698_vm0, %v446_v1, 0  ;;  %v556_v29 = vrot.slane %v554_v18, 4  ;;  %v559_v30 = vrot.slane %v557_v19, 5  ;;  %v3377_v31 = vld [vmem:[%s3324_s21 + $0x10] sm:$0xf]  ;;  %v465_v32 = vrot.slane %v464_v21, 4 }
  0x49   : > { %2886 = vmatpush3.bf16.msra.mxu1 %v700_v3  ;;  %2684 = vmatpush3.bf16.msra.mxu0 %v700_v3  ;;  %v565_v33 = vrot.slane %v563_v22, 5  ;;  %v569_v34 = vrot.slane %v567_v23, 4  ;;  %v575_v35 = vrot.slane %v573_v24, 5  ;;  %v475_v36 = vrot.slane %v474_v27, 4  ;;  %v3384_v42 = vld [vmem:[%s3324_s21 + $0x14] sm:$0x1] }
  0x4a   : > { %2889 = vmatprep.subr.msk.bf16.mxu1 %vm698_vm0, %v445_v20  ;;  %v560_v37 = vor.u32 %v559_v30, %v556_v29  ;;  %v482_v38 = vshrl.u32 %v3368_v25, 16  ;;  %v485_v39 = vshll.u32 %v3368_v25, 16  ;;  %v470_v40 = vsel %vm3372_vm4, %v465_v32, %v469_v14  ;;  %v3389_v45 = vld [vmem:[%s3324_s21 + $0x3c] sm:$0xf]  ;;  %v447_v50 = vld [vmem:[%s4135_s1 + $0x4] sm:$0x3] }
  0x4b   : > { %v570_v41 = vor.u32 %v569_v34, %v565_v33  ;;  %v491_v43 = vshll.u32 %v3377_v31, 16  ;;  %v495_v44 = vshrl.u32 %v3377_v31, 16  ;;  %v480_v46 = vsel %vm3372_vm4, %v475_v36, %v479_v28  ;;  %2890 = vmatprep.subr.msk.bf16.mxu0 %vm698_vm0, %v447_v50  ;;  %v3401_v58 = vld [vmem:[%s3324_s21 + $0x40] sm:$0xf]  ;;  %v3408_v62 = vld [vmem:[%s3324_s21 + $0x44] sm:$0x1] }
  0x4c   : > { %v561_v47 = vrot.slane %v560_v37, 4  ;;  %v484_v48 = vrot.slane %v482_v38, 4  ;;  %v487_v49 = vrot.slane %v485_v39, 5  ;;  %v2450_v51 = vcombine.low %v470_v40, %v480_v46  ;;  %v3415_v7 = vld [vmem:[%s3324_s21 + $0x18] sm:$0xf] }
  0x4d   : > { %v571_v52 = vrot.slane %v570_v41, 4  ;;  %v493_v53 = vrot.slane %v491_v43, 5  ;;  %v497_v54 = vrot.slane %v495_v44, 4  ;;  %v501_v57 = vshll.u32 %v3384_v42, 16  ;;  %v3420_v13 = vld [vmem:[%s3324_s21 + $0x1c] sm:$0xf] }
  0x4e   : > { %v566_v55 = vsel %vm3372_vm4, %v561_v47, %v565_v33  ;;  %v488_v56 = vor.u32 %v487_v49, %v484_v48  ;;  %2685 = vmatprep.mubr.msk.bf16.mxu0 %vm673_vm3, %v2450_v51  ;;  %v983_v61 = vrot.slane %v3377_v31, 5  ;;  %v578_v63 = vshrl.u32 %v3389_v45, 16  ;;  %v3429_v21 = vld [vmem:[%s3324_s21 + $0x20] sm:$0x1]  ;;  %v3435_v28 = vld [vmem:[%s3324_s21 + $0x48] sm:$0xf] }
  0x4f   : > { %v576_v59 = vsel %vm3372_vm4, %v571_v52, %v575_v35  ;;  %v498_v60 = vor.u32 %v497_v54, %v493_v53  ;;  %v503_v3 = vrot.slane %v501_v57, 5  ;;  %v581_v6 = vshll.u32 %v3389_v45, 16  ;;  %v3444_v37 = vld [vmem:[%s3324_s21 + $0x4c] sm:$0xf]  ;;  %v3450_v41 = vld [vmem:[%s3324_s21 + $0x50] sm:$0x1] }
  0x50   : > { %v3411_v0 = vcombine.low %v566_v55, %v576_v59  ;;  %v489_v1 = vrot.slane %v488_v56, 4  ;;  %v580_v9 = vrot.slane %v578_v63, 4  ;;  %v587_v10 = vshll.u32 %v3401_v58, 16  ;;  %v3456_v49 = vld [vmem:[%s4135_s1 + $0x8] sm:$0x3] }
  0x51   : > { %v499_v8 = vrot.slane %v498_v60, 4  ;;  %v591_v11 = vshrl.u32 %v3401_v58, 16  ;;  %v583_v17 = vrot.slane %v581_v6, 5  ;;  %v597_v18 = vshll.u32 %v3408_v62, 16  ;;  %v3462_v54 = vld [vmem:[%s3324_s21 + $0x24] sm:$0xf] }
  0x52   : > { %2693 = vmatprep.mubr.msk.bf16.mxu1 %vm673_vm3, %v3411_v0  ;;  %v494_v14 = vsel %vm3372_vm4, %v489_v1, %v493_v53  ;;  %v864_v19 = vsel %vm698_vm0, %v445_v20, 0  ;;  %v589_v23 = vrot.slane %v587_v10, 5  ;;  %v1079_v27 = vsel %vm698_vm0, %v447_v50, 0  ;;  %v3470_v60 = vld [vmem:[%s3324_s21 + $0x28] sm:$0xf] }
  0x53   : > { %v504_v22 = vsel %vm3372_vm4, %v499_v8, %v503_v3  ;;  %v593_v24 = vrot.slane %v591_v11, 4  ;;  %v584_v30 = vor.u32 %v583_v17, %v580_v9  ;;  %v599_v32 = vrot.slane %v597_v18, 5  ;;  %v3477_v8 = vld [vmem:[%s3324_s21 + $0x2c] sm:$0x1]  ;;  %v3483_v17 = vld [vmem:[%s4135_s1 + $0x6] sm:$0x3] }
  0x54   : > { %v3437_v29 = vcombine.low %v494_v14, %v504_v22  ;;  %v506_v33 = vshrl.u32 %v3415_v7, 16  ;;  %v509_v20 = vshll.u32 %v3415_v7, 16  ;;  %v515_v35 = vshll.u32 %v3420_v13, 16 }
  0x55   : > { %v594_v34 = vor.u32 %v593_v24, %v589_v23  ;;  %v519_v36 = vshrl.u32 %v3420_v13, 16  ;;  %v585_v38 = vrot.slane %v584_v30, 4  ;;  %v525_v40 = vshll.u32 %v3429_v21, 16 }
  0x56   : > { %2686 = vmatmul.mubr.msk.bf16.vlgmr.msra.gmra.mxu0 %vm673_vm3, %v3437_v29  ;;  %v508_v39 = vrot.slane %v506_v33, 4  ;;  %v602_v43 = vshrl.u32 %v3435_v28, 16  ;;  %v511_v46 = vrot.slane %v509_v20, 5  ;;  %v517_v47 = vrot.slane %v515_v35, 5 }
  0x57   : > { %v595_v44 = vrot.slane %v594_v34, 4  ;;  %2720 = vmatpush3.bf16.msra.mxu0 %v1079_v27  ;;  %v521_v48 = vrot.slane %v519_v36, 4  ;;  %v590_v50 = vsel %vm3372_vm4, %v585_v38, %v589_v23  ;;  %v527_v51 = vrot.slane %v525_v40, 5  ;;  %v3489_v27 = vld [vmem:[%s3324_s21 + $0x54] sm:$0xf] }
  0x58   : > { %v604_v52 = vrot.slane %v602_v43, 4  ;;  %v605_v53 = vshll.u32 %v3435_v28, 16  ;;  %2892 = vmatprep.subr.msk.bf16.mxu0 %vm698_vm0, %v3456_v49  ;;  %v512_v56 = vor.u32 %v511_v46, %v508_v39  ;;  %v611_v59 = vshll.u32 %v3444_v37, 16  ;;  %v3499_v39 = vld [vmem:[%s3324_s21 + $0x58] sm:$0xf] }
  0x59   : > { %v600_v55 = vsel %vm3372_vm4, %v595_v44, %v599_v32  ;;  %v522_v57 = vor.u32 %v521_v48, %v517_v47  ;;  %v615_v3 = vshrl.u32 %v3444_v37, 16  ;;  %v621_v6 = vshll.u32 %v3450_v41, 16 }
  0x5a   : > { %v3472_v63 = vcombine.low %v590_v50, %v600_v55  ;;  %v607_v1 = vrot.slane %v605_v53, 5  ;;  %v513_v9 = vrot.slane %v512_v56, 4  ;;  %v613_v11 = vrot.slane %v611_v59, 5  ;;  %v3511_v50 = vld [vmem:[%s3324_s21 + $0x5c] sm:$0x1] }
  0x5b   : > { %v523_v10 = vrot.slane %v522_v57, 4  ;;  %v530_v14 = vshrl.u32 %v3462_v54, 16  ;;  %v617_v22 = vrot.slane %v615_v3, 4  ;;  %v623_v23 = vrot.slane %v621_v6, 5 }
  0x5c   : > { %2694 = vmatmul.mubr.msk.bf16.vlgmr.msra.gmra.mxu1 %vm673_vm3, %v3472_v63  ;;  %v608_v18 = vor.u32 %v607_v1, %v604_v52  ;;  %v533_v24 = vshll.u32 %v3462_v54, 16  ;;  %v518_v30 = vsel %vm3372_vm4, %v513_v9, %v517_v47  ;;  %v539_v34 = vshll.u32 %v3470_v60, 16 }
  0x5d   : > { %2702 = vmatpush3.bf16.msra.mxu1 %v864_v19  ;;  %v528_v32 = vsel %vm3372_vm4, %v523_v10, %v527_v51  ;;  %v532_v33 = vrot.slane %v530_v14, 4  ;;  %v618_v36 = vor.u32 %v617_v22, %v613_v11  ;;  %v543_v40 = vshrl.u32 %v3470_v60, 16 }
  0x5e   : > { %v3496_v20 = vcombine.low %v518_v30, %v528_v32  ;;  %v609_v35 = vrot.slane %v608_v18, 4  ;;  %v535_v38 = vrot.slane %v533_v24, 5  ;;  %2891 = vmatprep.subr.msk.bf16.mxu1 %vm698_vm0, %v3483_v17  ;;  %v541_v19 = vrot.slane %v539_v34, 5 }
  0x5f   : > { %v549_v43 = vshll.u32 %v3477_v8, 16  ;;  %v626_v44 = vshrl.u32 %v3489_v27, 16  ;;  %v619_v47 = vrot.slane %v618_v36, 4  ;;  %v629_v51 = vshll.u32 %v3489_v27, 16 }
  0x60   : > { %2689 = vmatprep.mubr.msk.bf16.mxu0 %vm673_vm3, %v3496_v20  ;;  %v614_v46 = vsel %vm3372_vm4, %v609_v35, %v613_v11  ;;  %v536_v48 = vor.u32 %v535_v38, %v532_v33  ;;  %v545_v52 = vrot.slane %v543_v40, 4  ;;  %v635_v56 = vshll.u32 %v3499_v39, 16 }
  0x61   : > { %v551_v53 = vrot.slane %v549_v43, 5  ;;  %v628_v55 = vrot.slane %v626_v44, 4  ;;  %v624_v57 = vsel %vm3372_vm4, %v619_v47, %v623_v23  ;;  %v631_v1 = vrot.slane %v629_v51, 5 }
  0x62   : > { %v537_v59 = vrot.slane %v536_v48, 4  ;;  %v639_v3 = vshrl.u32 %v3499_v39, 16  ;;  %v3518_v6 = vcombine.low %v614_v46, %v624_v57  ;;  %v546_v9 = vor.u32 %v545_v52, %v541_v19 }
  0x63   : > { %v637_v10 = vrot.slane %v635_v56, 5  ;;  %v645_v11 = vshll.u32 %v3511_v50, 16  ;;  %v986_v14 = vrot.slane %v3384_v42, 5  ;;  %v632_v18 = vor.u32 %v631_v1, %v628_v55 }
  0x64   : > { %v641_v22 = vrot.slane %v639_v3, 4  ;;  %vm971_vm5 = vcmask 1042432   ;;  %2697 = vmatprep.mubr.msk.bf16.mxu1 %vm673_vm3, %v3518_v6  ;;  %v542_v23 = vsel %vm3372_vm4, %v537_v59, %v541_v19  ;;  %v547_v24 = vrot.slane %v546_v9, 4 }
  0x65   : > { %vm972_vm6 = vcmask 1046532   ;;  %v2482_v30 = vrot.slane %v3333_v2, 9  ;;  %v633_v32 = vrot.slane %v632_v18, 4  ;;  %v647_v34 = vrot.slane %v645_v11, 5 }
  0x66   : > { %v642_v33 = vor.u32 %v641_v22, %v637_v10  ;;  %vm3527_vm7 = vmor %vm971_vm5, %vm972_vm6  ;;  %v976_v42 = vrot.slane %v3339_v4, 5  ;;  %v979_v36 = vrot.slane %v3342_v5, 5  ;;  %v552_v38 = vsel %vm3372_vm4, %v547_v24, %v551_v53 }
  0x67   : > { %v2483_v19 = vrot.slane %v3368_v25, 9  ;;  %v985_v40 = vrot.slane %v983_v61, 4  ;;  %v3538_v43 = vcombine.low %v542_v23, %v552_v38  ;;  %v638_v44 = vsel %vm3372_vm4, %v633_v32, %v637_v10 }
  0x68   : > { %v643_v46 = vrot.slane %v642_v33, 4  ;;  %v2466_v47 = vcombine.low %v3333_v2, %v3339_v4  ;;  %v977_v5 = vsel %vm3527_vm7, %v2482_v30, %v976_v42  ;;  %v978_v48 = vrot.slane %v976_v42, 4  ;;  %v451_v33 = vld [vmem:[%s4135_s1 + $0xc] sm:$0x3] }
  0x69   : > { %2690 = vmatmul.mubr.msk.bf16.gmra.mxu0 %vm673_vm3, %v3538_v43  ;;  %v984_v52 = vsel %vm3527_vm7, %v2483_v19, %v983_v61  ;;  %v987_v53 = vsel %vm3527_vm7, %v985_v40, %v986_v14  ;;  %v2484_v2 = vrot.slane %v3415_v7, 9  ;;  %v990_v56 = vrot.slane %v3420_v13, 5 }
  0x6a   : > { %v648_v51 = vsel %vm3372_vm4, %v643_v46, %v647_v34  ;;  %v980_v55 = vsel %vm3527_vm7, %v978_v48, %v979_v36  ;;  %v993_v57 = vrot.slane %v3429_v21, 5  ;;  %v997_v1 = vrot.slane %v3470_v60, 5 }
  0x6b   : > { %v3557_v4 = vcombine.low %v638_v44, %v648_v51  ;;  %v2490_v59 = vcombine.low %v977_v5, %v980_v55  ;;  %v991_v61 = vsel %vm3527_vm7, %v2484_v2, %v990_v56  ;;  %v992_v3 = vrot.slane %v990_v56, 4 }
  0x6c   : > { %v1007_v9 = vrot.slane %v3356_v16, 5  ;;  %v3571_v10 = vcombine.low %v984_v52, %v987_v53  ;;  %v1004_v21 = vrot.slane %v3353_v15, 5  ;;  %v2485_v14 = vrot.slane %v3462_v54, 9 }
  0x6d   : > { %2698 = vmatmul.mubr.msk.bf16.gmra.mxu1 %vm673_vm3, %v3557_v4  ;;  %2721 = vmatprep.mubr.msk.bf16.mxu0 %vm673_vm3, %v2490_v59  ;;  %v994_v11 = vsel %vm3527_vm7, %v992_v3, %v993_v57  ;;  %v999_v18 = vrot.slane %v997_v1, 4  ;;  %v1000_v22 = vrot.slane %v3477_v8, 5  ;;  %v1349_v23 = vsel %vm698_vm0, %v3456_v49, 0 }
  0x6e   : > { %2703 = vmatprep.mubr.msk.bf16.mxu1 %vm673_vm3, %v2466_v47  ;;  %v3580_v16 = vcombine.low %v991_v61, %v994_v11  ;;  %v2486_v24 = vrot.slane %v3350_v12, 9  ;;  %v1006_v30 = vrot.slane %v1004_v21, 4  ;;  %v2467_v32 = vcombine.low %v3368_v25, %v3377_v31 }
  0x6f   : > { %v3592_v8 = vcombine.low %v3415_v7, %v3420_v13  ;;  %v1203_v49 = vsel %vm698_vm0, %v3483_v17, 0  ;;  %v998_v25 = vsel %vm3527_vm7, %v2485_v14, %v997_v1  ;;  %v1001_v31 = vsel %vm3527_vm7, %v999_v18, %v1000_v22  ;;  %v450_v17 = vld [vmem:[%s4135_s1 + $0xa] sm:$0x3]  ;;  %v3693_v1 = vld [vmem:[%s3324_s21 + $0x64] sm:$0xf] }
  0x70   : > { %v1011_v34 = vrot.slane %v3401_v58, 5  ;;  %v1005_v42 = vsel %vm3527_vm7, %v2486_v24, %v1004_v21  ;;  %v1008_v7 = vsel %vm3527_vm7, %v1006_v30, %v1007_v9  ;;  %v1018_v13 = vrot.slane %v3444_v37, 5  ;;  %v452_v21 = vld [vmem:[%s4135_s1 + $0xe] sm:$0x3] }
  0x71   : > { %2722 = vmatmul.mubr.msk.bf16.vlgmr.msra.gmra.mxu0 %vm673_vm3, %v3571_v10  ;;  %v3615_v36 = vcombine.low %v998_v25, %v1001_v31  ;;  %v3617_v38 = vcombine.low %v1005_v42, %v1008_v7  ;;  %v2487_v19 = vrot.slane %v3389_v45, 9  ;;  %v1014_v44 = vrot.slane %v3408_v62, 5 }
  0x72   : > { %2756 = vmatpush3.bf16.msra.mxu0 %v1349_v23  ;;  %2725 = vmatprep.mubr.msk.bf16.mxu0 %vm673_vm3, %v3580_v16  ;;  %v1013_v40 = vrot.slane %v1011_v34, 4  ;;  %v2488_v46 = vrot.slane %v3435_v28, 9  ;;  %v1020_v47 = vrot.slane %v1018_v13, 4  ;;  %v1021_v5 = vrot.slane %v3450_v41, 5  ;;  %v441_v23 = vld [vmem:[%s3324_s21 + $0x68] sm:$0x1] }
  0x73   : > { %2894 = vmatprep.subr.msk.bf16.mxu0 %vm698_vm0, %v451_v33  ;;  %v3626_v48 = vcombine.low %v3462_v54, %v3470_v60  ;;  %v3632_v51 = vcombine.low %v3350_v12, %v3353_v15  ;;  %v1012_v62 = vsel %vm3527_vm7, %v2487_v19, %v1011_v34  ;;  %v1025_v52 = vrot.slane %v3499_v39, 5 }
  0x74   : > { %v1015_v41 = vsel %vm3527_vm7, %v1013_v40, %v1014_v44  ;;  %v1019_v54 = vsel %vm3527_vm7, %v2488_v46, %v1018_v13  ;;  %v1022_v60 = vsel %vm3527_vm7, %v1020_v47, %v1021_v5  ;;  %v2489_v53 = vrot.slane %v3489_v27, 9  ;;  %v442_v44 = vld [vmem:[%s3324_s21 + $0x6c] sm:$0xf]  ;;  %v443_v46 = vld [vmem:[%s3324_s21 + $0x70] sm:$0xf] }
  0x75   : > { %2704 = vmatmul.mubr.msk.bf16.vlgmr.msra.gmra.mxu1 %vm673_vm3, %v2467_v32  ;;  %v3649_v12 = vcombine.low %v1012_v62, %v1015_v41  ;;  %v3651_v15 = vcombine.low %v1019_v54, %v1022_v60  ;;  %v1027_v2 = vrot.slane %v1025_v52, 4  ;;  %v1028_v55 = vrot.slane %v3511_v50, 5 }
  0x76   : > { %2738 = vmatpush3.bf16.msra.mxu1 %v1203_v49  ;;  %2707 = vmatprep.mubr.msk.bf16.mxu1 %vm673_vm3, %v3592_v8  ;;  %v3657_v56 = vcombine.low %v3389_v45, %v3401_v58  ;;  %v3663_v57 = vcombine.low %v3435_v28, %v3444_v37  ;;  %v1026_v59 = vsel %vm3527_vm7, %v2489_v53, %v1025_v52  ;;  %v1603_v28 = vsel %vm698_vm0, %v451_v33, 0  ;;  %v3690_v37 = vld [vmem:[%s3324_s21 + $0x60] sm:$0xf] }
  0x77   : > { %2893 = vmatprep.subr.msk.bf16.mxu1 %vm698_vm0, %v450_v17  ;;  %v1029_v50 = vsel %vm3527_vm7, %v1027_v2, %v1028_v55  ;;  %v3679_v58 = vcombine.low %v3489_v27, %v3499_v39  ;;  %v453_v27 = vld [vmem:[%s4135_s1 + $0x10] sm:$0x3]  ;;  %v1319_v39 = vshrl.u32 %v3690_v37, 16  ;;  %v1322_v61 = vshll.u32 %v3690_v37, 16 }
  0x78   : > { %v3675_v45 = vcombine.low %v1026_v59, %v1029_v50  ;;  %v1332_v3 = vshrl.u32 %v3693_v1, 16  ;;  %v1328_v9 = vshll.u32 %v3693_v1, 16  ;;  %v2506_v7 = vcombine.low %v3690_v37, %v3693_v1 }
  0x79   : > { %2726 = vmatmul.mubr.msk.bf16.gmra.mxu0 %vm673_vm3, %v3615_v36  ;;  %v1321_v11 = vrot.slane %v1319_v39, 4  ;;  %v1324_v14 = vrot.slane %v1322_v61, 5  ;;  %v1879_v13 = vsel %vm698_vm0, %v453_v27, 0  ;;  %v1470_v40 = vrot.slane %v441_v23, 5 }
  0x7a   : > { %2729 = vmatprep.mubr.msk.bf16.mxu0 %vm673_vm3, %v3617_v38  ;;  %v1330_v18 = vrot.slane %v1328_v9, 5  ;;  %v1334_v22 = vrot.slane %v1332_v3, 4  ;;  %v1719_v62 = vshrl.u32 %v442_v44, 16  ;;  %v1722_v41 = vshll.u32 %v442_v44, 16 }
  0x7b   : > { %v1325_v24 = vor.u32 %v1324_v14, %v1321_v11  ;;  %v1732_v52 = vshrl.u32 %v443_v46, 16  ;;  %v1867_v53 = vrot.slane %v443_v46, 5  ;;  %v2552_v55 = vrot.slane %v442_v44, 9 }
  0x7c   : > { %v1335_v30 = vor.u32 %v1334_v22, %v1330_v18  ;;  %v1724_v54 = vrot.slane %v1722_v41, 5 }
  0x7d   : > { %2708 = vmatmul.mubr.msk.bf16.gmra.mxu1 %vm673_vm3, %v3626_v48  ;;  %v1326_v33 = vrot.slane %v1325_v24, 4 }
  0x7e   : > { %2711 = vmatprep.mubr.msk.bf16.mxu1 %vm673_vm3, %v3632_v51  ;;  %v1336_v49 = vrot.slane %v1335_v30, 4 }
  0x7f   : > { %v1331_v31 = vsel %vm3372_vm4, %v1326_v33, %v1330_v18 }
  0x81   : > { %2730 = vmatmul.mubr.msk.bf16.gmra.mxu0 %vm673_vm3, %v3649_v12 }
  0x82   : > { %2733 = vmatprep.mubr.msk.bf16.mxu0 %vm673_vm3, %v3651_v15 }
  0x85   : > { %2712 = vmatmul.mubr.msk.bf16.gmra.mxu1 %vm673_vm3, %v3657_v56 }
  0x86   : > { %2715 = vmatprep.mubr.msk.bf16.mxu1 %vm673_vm3, %v3663_v57 }
  0x89   : > { %2734 = vmatmul.mubr.msk.bf16.gmra.mxu0 %vm673_vm3, %v3675_v45 }
  0x8a   : > { %2757 = vmatprep.mubr.msk.bf16.mxu0 %vm673_vm3, %v3437_v29  ;;  %v1479_v29 = vsel %vm698_vm0, %v450_v17, 0  ;;  %v1749_v17 = vsel %vm698_vm0, %v452_v21, 0 }
  0x8d   : > { %2716 = vmatmul.mubr.msk.bf16.gmra.mxu1 %vm673_vm3, %v3679_v58 }
  0x8e   : > { %2739 = vmatprep.mubr.msk.bf16.mxu1 %vm673_vm3, %v2467_v32  ;;  %v1338_v32 = vshll.u32 %v441_v23, 16 }
  0x90   : > { %v1340_v25 = vrot.slane %v1338_v32, 5 }
  0x91   : > { %2758 = vmatmul.mubr.msk.bf16.vlgmr.msra.gmra.mxu0 %vm673_vm3, %v3496_v20 }
  0x92   : > { %2792 = vmatpush3.bf16.msra.mxu0 %v1603_v28  ;;  %2761 = vmatprep.mubr.msk.bf16.mxu0 %vm673_vm3, %v3538_v43  ;;  %v1341_v34 = vsel %vm3372_vm4, %v1336_v49, %v1340_v25 }
  0x93   : > { %2896 = vmatprep.subr.msk.bf16.mxu0 %vm698_vm0, %v453_v27  ;;  %v3737_v42 = vcombine.low %v1331_v31, %v1341_v34 }
  0x95   : > { %2740 = vmatmul.mubr.msk.bf16.vlgmr.msra.gmra.mxu1 %vm673_vm3, %v3592_v8 }
  0x96   : > { %2774 = vmatpush3.bf16.msra.mxu1 %v1479_v29  ;;  %2743 = vmatprep.mubr.msk.bf16.mxu1 %vm673_vm3, %v3626_v48 }
  0x97   : > { %2895 = vmatprep.subr.msk.bf16.mxu1 %vm698_vm0, %v452_v21 }
  0x99   : > { %2762 = vmatmul.mubr.msk.bf16.gmra.mxu0 %vm673_vm3, %v3411_v0 }
  0x9a   : > { %2765 = vmatprep.mubr.msk.bf16.mxu0 %vm673_vm3, %v3472_v63 }
  0x9d   : > { %2744 = vmatmul.mubr.msk.bf16.gmra.mxu1 %vm673_vm3, %v3632_v51 }
  0x9e   : > { %2747 = vmatprep.mubr.msk.bf16.mxu1 %vm673_vm3, %v3657_v56 }
  0xa1   : > { %2766 = vmatmul.mubr.msk.bf16.gmra.mxu0 %vm673_vm3, %v3518_v6 }
  0xa2   : > { %2769 = vmatprep.mubr.msk.bf16.mxu0 %vm673_vm3, %v3557_v4 }
  0xa5   : > { %2748 = vmatmul.mubr.msk.bf16.gmra.mxu1 %vm673_vm3, %v3663_v57 }
  0xa6   : > { %2751 = vmatprep.mubr.msk.bf16.mxu1 %vm673_vm3, %v3679_v58 }
  0xa9   : > { %2770 = vmatmul.mubr.msk.bf16.gmra.mxu0 %vm673_vm3, %v3737_v42 }
  0xaa   : > { %2793 = vmatprep.mubr.msk.bf16.mxu0 %vm673_vm3, %v3592_v8  ;;  %v2524_v8 = vrot.slane %v3690_v37, 9 }
  0xad   : > { %2752 = vmatmul.mubr.msk.bf16.gmra.mxu1 %vm673_vm3, %v2506_v7 }
  0xae   : > { %2775 = vmatprep.mubr.msk.bf16.mxu1 %vm673_vm3, %v3571_v10  ;;  %v1467_v10 = vrot.slane %v3693_v1, 5 }
  0xb0   : > { %v1469_v19 = vrot.slane %v1467_v10, 4  ;;  %v1468_v47 = vsel %vm3527_vm7, %v2524_v8, %v1467_v10 }
  0xb1   : > { %2794 = vmatmul.mubr.msk.bf16.vlgmr.msra.gmra.mxu0 %vm673_vm3, %v3626_v48  ;;  %v2534_v48 = vcombine.low %v442_v44, %v443_v46 }
  0xb2   : > { %2828 = vmatpush3.bf16.msra.mxu0 %v1879_v13  ;;  %2797 = vmatprep.mubr.msk.bf16.mxu0 %vm673_vm3, %v3632_v51  ;;  %v1471_v5 = vsel %vm3527_vm7, %v1469_v19, %v1470_v40 }
  0xb3   : > { %v2525_v51 = vcombine.low %v1468_v47, %v1471_v5 }
  0xb5   : > { %2776 = vmatmul.mubr.msk.bf16.vlgmr.msra.gmra.mxu1 %vm673_vm3, %v3580_v16 }
  0xb6   : > { %2810 = vmatpush3.bf16.msra.mxu1 %v1749_v17  ;;  %2779 = vmatprep.mubr.msk.bf16.mxu1 %vm673_vm3, %v3615_v36 }
  0xb9   : > { %2798 = vmatmul.mubr.msk.bf16.gmra.mxu0 %vm673_vm3, %v3657_v56 }
  0xba   : > { %2801 = vmatprep.mubr.msk.bf16.mxu0 %vm673_vm3, %v3663_v57 }
  0xbd   : > { %2780 = vmatmul.mubr.msk.bf16.gmra.mxu1 %vm673_vm3, %v3617_v38 }
  0xbe   : > { %2783 = vmatprep.mubr.msk.bf16.mxu1 %vm673_vm3, %v3649_v12 }
  0xc1   : > { %2802 = vmatmul.mubr.msk.bf16.gmra.mxu0 %vm673_vm3, %v3679_v58 }
  0xc2   : > { %2805 = vmatprep.mubr.msk.bf16.mxu0 %vm673_vm3, %v2506_v7 }
  0xc5   : > { %2784 = vmatmul.mubr.msk.bf16.gmra.mxu1 %vm673_vm3, %v3651_v15 }
  0xc6   : > { %2787 = vmatprep.mubr.msk.bf16.mxu1 %vm673_vm3, %v3675_v45 }
  0xc9   : > { %2806 = vmatmul.mubr.msk.bf16.gmra.mxu0 %vm673_vm3, %v2534_v48 }
  0xca   : > { %2829 = vmatprep.mubr.msk.bf16.mxu0 %vm673_vm3, %v3580_v16  ;;  %v1728_v16 = vshll.u32 %v443_v46, 16 }
  0xcc   : > { %v1730_v60 = vrot.slane %v1728_v16, 5 }
  0xcd   : > { %2788 = vmatmul.mubr.msk.bf16.gmra.mxu1 %vm673_vm3, %v2525_v51 }
  0xce   : > { %2811 = vmatprep.mubr.msk.bf16.mxu1 %vm673_vm3, %v3496_v20  ;;  %v1721_v20 = vrot.slane %v1719_v62, 4 }
  0xd1   : > { %2830 = vmatmul.mubr.msk.bf16.vlgmr.msra.gmra.mxu0 %vm673_vm3, %v3615_v36  ;;  %v1734_v36 = vrot.slane %v1732_v52, 4 }
  0xd2   : > { %2833 = vmatprep.mubr.msk.bf16.mxu0 %vm673_vm3, %v3617_v38  ;;  %v444_v38 = vld [vmem:[%s3324_s21 + $0x74] sm:$0x1] }
  0xd3   : > { %v1738_v2 = vshll.u32 %v444_v38, 16  ;;  %v1870_v56 = vrot.slane %v444_v38, 5 }
  0xd5   : > { %2812 = vmatmul.mubr.msk.bf16.vlgmr.msra.gmra.mxu1 %vm673_vm3, %v3538_v43  ;;  %v1735_v43 = vor.u32 %v1734_v36, %v1730_v60 }
  0xd6   : > { %2815 = vmatprep.mubr.msk.bf16.mxu1 %vm673_vm3, %v3411_v0  ;;  %v1725_v0 = vor.u32 %v1724_v54, %v1721_v20 }
  0xd7   : > { %v1736_v59 = vrot.slane %v1735_v43, 4 }
  0xd8   : > { %v1726_v57 = vrot.slane %v1725_v0, 4 }
  0xd9   : > { %2834 = vmatmul.mubr.msk.bf16.gmra.mxu0 %vm673_vm3, %v3649_v12  ;;  %v1869_v12 = vrot.slane %v1867_v53, 4 }
  0xda   : > { %2837 = vmatprep.mubr.msk.bf16.mxu0 %vm673_vm3, %v3651_v15  ;;  %v1740_v15 = vrot.slane %v1738_v2, 5  ;;  %v1731_v50 = vsel %vm3372_vm4, %v1726_v57, %v1730_v60 }
  0xdd   : > { %2816 = vmatmul.mubr.msk.bf16.gmra.mxu1 %vm673_vm3, %v3472_v63  ;;  %v1868_v63 = vsel %vm3527_vm7, %v2552_v55, %v1867_v53 }
  0xde   : > { %2819 = vmatprep.mubr.msk.bf16.mxu1 %vm673_vm3, %v3518_v6  ;;  %v1871_v6 = vsel %vm3527_vm7, %v1869_v12, %v1870_v56 }
  0xdf   : > { %v2553_v58 = vcombine.low %v1868_v63, %v1871_v6 }
  0xe1   : > { %2838 = vmatmul.mubr.msk.bf16.gmra.mxu0 %vm673_vm3, %v3675_v45  ;;  %v1741_v45 = vsel %vm3372_vm4, %v1736_v59, %v1740_v15 }
  0xe2   : > { %2841 = vmatprep.mubr.msk.bf16.mxu0 %vm673_vm3, %v2525_v51  ;;  %v2543_v28 = vcombine.low %v1731_v50, %v1741_v45 }
  0xe5   : > { %2820 = vmatmul.mubr.msk.bf16.gmra.mxu1 %vm673_vm3, %v3557_v4 }
  0xe6   : > { %2823 = vmatprep.mubr.msk.bf16.mxu1 %vm673_vm3, %v3737_v42 }
  0xe9   : > { %2842 = vmatmul.mubr.msk.bf16.gmra.mxu0 %vm673_vm3, %v2553_v58 }
  0xed   : > { %2824 = vmatmul.mubr.msk.bf16.gmra.mxu1 %vm673_vm3, %v2543_v28 }
 0x116   : > { %v2687_v35 = vpop.f32.mrf.mxu0 }
 0x118   : > { %v736_v1 = vpop.f32.mrf.mxu0 }
 0x11a   : > { %v2688_v4 = vpop.f32.mrf.mxu0 }
 0x11c   : > { %v2695_v37 = vpop.f32.mrf.mxu1  ;;  %v739_v39 = vpop.f32.mrf.mxu0 }
 0x11e   : > { %v768_v27 = vpop.f32.mrf.mxu1 }
 0x120   : > { %v2696_v29 = vpop.f32.mrf.mxu1 }
 0x122   : > { %v771_v61 = vpop.f32.mrf.mxu1 }
 0x129   : > { %v2691_v3 = vpop.f32.mrf.mxu0 }
 0x12b   : > { %v752_v9 = vpop.f32.mrf.mxu0 }
 0x12d   : > { %v2699_v21 = vpop.f32.mrf.mxu1  ;;  %v2692_v11 = vpop.f32.mrf.mxu0 }
 0x12f   : > { %v784_v26 = vpop.f32.mrf.mxu1  ;;  %v755_v14 = vpop.f32.mrf.mxu0 }
 0x131   : > { %v2700_v18 = vpop.f32.mrf.mxu1  ;;  %v2723_v22 = vpop.f32.mrf.mxu0 }
 0x133   : > { %v3821_v23 = vpop.f32.mrf.mxu1  ;;  %v1115_v24 = vpop.f32.mrf.mxu0 }
 0x135   : > { %v2705_v30 = vpop.f32.mrf.mxu1  ;;  %v2724_v33 = vpop.f32.mrf.mxu0 }
 0x136   : > { %v909_v32 = vadd.f32 %v2705_v30, %v2687_v35 }
 0x137   : > { %v900_v49 = vpop.f32.mrf.mxu1  ;;  %v1118_v34 = vpop.f32.mrf.mxu0 }
 0x138   : > { %v1180_v25 = vadd.f32 %v2723_v22, %v909_v32  ;;  %v901_v31 = vadd.f32 %v900_v49, %v736_v1 }
 0x139   : > { %v2706_v42 = vpop.f32.mrf.mxu1  ;;  %v2727_v17 = vpop.f32.mrf.mxu0 }
 0x13a   : > { %v1178_v7 = vadd.f32 %v1115_v24, %v901_v31  ;;  %v912_v13 = vadd.f32 %v2706_v42, %v2688_v4 }
 0x13b   : > { %v903_v10 = vpop.f32.mrf.mxu1  ;;  %v1131_v40 = vpop.f32.mrf.mxu0 }
 0x13c   : > { %v1181_v8 = vadd.f32 %v2724_v33, %v912_v13  ;;  %v904_v19 = vadd.f32 %v903_v10, %v739_v39 }
 0x13d   : > { %v2709_v44 = vpop.f32.mrf.mxu1  ;;  %v2728_v5 = vpop.f32.mrf.mxu0 }
 0x13e   : > { %v1179_v46 = vadd.f32 %v1118_v34, %v904_v19  ;;  %v925_v47 = vadd.f32 %v2709_v44, %v2691_v3 }
 0x13f   : > { %v916_v48 = vpop.f32.mrf.mxu1  ;;  %v1134_v41 = vpop.f32.mrf.mxu0 }
 0x140   : > { %v1184_v51 = vadd.f32 %v2727_v17, %v925_v47  ;;  %v917_v62 = vadd.f32 %v916_v48, %v752_v9 }
 0x141   : > { %v2710_v52 = vpop.f32.mrf.mxu1  ;;  %v2731_v54 = vpop.f32.mrf.mxu0 }
 0x142   : > { %v1182_v16 = vadd.f32 %v1131_v40, %v917_v62  ;;  %v928_v20 = vadd.f32 %v2710_v52, %v2692_v11 }
 0x143   : > { %v919_v60 = vpop.f32.mrf.mxu1  ;;  %v1147_v53 = vpop.f32.mrf.mxu0 }
 0x144   : > { %v1185_v36 = vadd.f32 %v2728_v5, %v928_v20  ;;  %v920_v38 = vadd.f32 %v919_v60, %v755_v14 }
 0x145   : > { %v2713_v0 = vpop.f32.mrf.mxu1  ;;  %v2732_v55 = vpop.f32.mrf.mxu0 }
 0x146   : > { %v1183_v43 = vadd.f32 %v1134_v41, %v920_v38  ;;  %v941_v2 = vadd.f32 %v2713_v0, %v2695_v37 }
 0x147   : > { %v932_v12 = vpop.f32.mrf.mxu1  ;;  %v1150_v59 = vpop.f32.mrf.mxu0 }
 0x148   : > { %v1188_v56 = vadd.f32 %v2731_v54, %v941_v2  ;;  %v933_v57 = vadd.f32 %v932_v12, %v768_v27 }
 0x149   : > { %v2714_v15 = vpop.f32.mrf.mxu1  ;;  %v2735_v50 = vpop.f32.mrf.mxu0 }
 0x14a   : > { %v1186_v63 = vadd.f32 %v1147_v53, %v933_v57  ;;  %v944_v6 = vadd.f32 %v2714_v15, %v2696_v29 }
 0x14b   : > { %v935_v45 = vpop.f32.mrf.mxu1  ;;  %v1163_v35 = vpop.f32.mrf.mxu0 }
 0x14c   : > { %v1189_v58 = vadd.f32 %v2732_v55, %v944_v6  ;;  %v936_v28 = vadd.f32 %v935_v45, %v771_v61 }
 0x14d   : > { %v2717_v1 = vpop.f32.mrf.mxu1  ;;  %v2736_v3 = vpop.f32.mrf.mxu0 }
 0x14e   : > { %v3823_v4 = vadd.f32 %v1150_v59, %v936_v28  ;;  %v957_v39 = vadd.f32 %v2717_v1, %v2699_v21 }
 0x14f   : > { %v948_v9 = vpop.f32.mrf.mxu1  ;;  %v1166_v14 = vpop.f32.mrf.mxu0 }
 0x150   : > { %v1192_v37 = vadd.f32 %v2735_v50, %v957_v39  ;;  %v949_v11 = vadd.f32 %v948_v9, %v784_v26 }
 0x151   : > { %v2718_v22 = vpop.f32.mrf.mxu1  ;;  %v2759_v30 = vpop.f32.mrf.mxu0 }
 0x152   : > { %v3825_v27 = vadd.f32 %v1163_v35, %v949_v11  ;;  %v960_v24 = vadd.f32 %v2718_v22, %v2700_v18 }
 0x153   : > { %v951_v29 = vpop.f32.mrf.mxu1  ;;  %v1385_v33 = vpop.f32.mrf.mxu0 }
 0x154   : > { %v3827_v32 = vadd.f32 %v2736_v3, %v960_v24  ;;  %v952_v61 = vadd.f32 %v951_v29, %v3821_v23 }
 0x155   : > { %v2741_v49 = vpop.f32.mrf.mxu1  ;;  %v2760_v34 = vpop.f32.mrf.mxu0 }
 0x156   : > { %v3830_v31 = vadd.f32 %v1166_v14, %v952_v61  ;;  %v1304_v21 = vadd.f32 %v2741_v49, %v1180_v25 }
 0x157   : > { %v1239_v42 = vpop.f32.mrf.mxu1  ;;  %v1388_v17 = vpop.f32.mrf.mxu0 }
 0x158   : > { %v3832_v13 = vadd.f32 %v2759_v30, %v1304_v21  ;;  %v1302_v26 = vadd.f32 %v1239_v42, %v1178_v7 }
 0x159   : > { %v2742_v10 = vpop.f32.mrf.mxu1  ;;  %v2763_v40 = vpop.f32.mrf.mxu0 }
 0x15a   : > { %v3834_v19 = vadd.f32 %v1385_v33, %v1302_v26  ;;  %v1305_v18 = vadd.f32 %v2742_v10, %v1181_v8 }
 0x15b   : > { %v1242_v44 = vpop.f32.mrf.mxu1  ;;  %v1401_v5 = vpop.f32.mrf.mxu0 }
 0x15c   : > { %v3836_v47 = vadd.f32 %v2760_v34, %v1305_v18  ;;  %v1303_v23 = vadd.f32 %v1242_v44, %v1179_v46 }
 0x15d   : > { %v2745_v48 = vpop.f32.mrf.mxu1  ;;  %v2764_v41 = vpop.f32.mrf.mxu0 }
 0x15e   : > { %v3838_v62 = vadd.f32 %v1388_v17, %v1303_v23  ;;  %v1308_v25 = vadd.f32 %v2745_v48, %v1184_v51 }
 0x15f   : > { %v1255_v52 = vpop.f32.mrf.mxu1  ;;  %v1404_v54 = vpop.f32.mrf.mxu0 }
 0x160   : > { %v3840_v20 = vadd.f32 %v2763_v40, %v1308_v25  ;;  %v1306_v7 = vadd.f32 %v1255_v52, %v1182_v16 }
 0x161   : > { %v2746_v60 = vpop.f32.mrf.mxu1  ;;  %v2767_v53 = vpop.f32.mrf.mxu0 }
 0x162   : > { %v3842_v38 = vadd.f32 %v1401_v5, %v1306_v7  ;;  %v1309_v8 = vadd.f32 %v2746_v60, %v1185_v36 }
 0x163   : > { %v1258_v0 = vpop.f32.mrf.mxu1  ;;  %v1417_v55 = vpop.f32.mrf.mxu0 }
 0x164   : > { %v3844_v2 = vadd.f32 %v2764_v41, %v1309_v8  ;;  %v1307_v46 = vadd.f32 %v1258_v0, %v1183_v43 }
 0x165   : > { %v2749_v12 = vpop.f32.mrf.mxu1  ;;  %v2768_v59 = vpop.f32.mrf.mxu0 }
 0x166   : > { %v3846_v57 = vadd.f32 %v1404_v54, %v1307_v46  ;;  %v1312_v51 = vadd.f32 %v2749_v12, %v1188_v56 }
 0x167   : > { %v1271_v15 = vpop.f32.mrf.mxu1  ;;  %v3850_v50 = vpop.f32.mrf.mxu0 }
 0x168   : > { %v3848_v6 = vadd.f32 %v2767_v53, %v1312_v51  ;;  %v1310_v16 = vadd.f32 %v1271_v15, %v1186_v63 }
 0x169   : > { %v2750_v45 = vpop.f32.mrf.mxu1  ;;  %v2771_v35 = vpop.f32.mrf.mxu0 }
 0x16a   : > { %v3852_v28 = vadd.f32 %v1417_v55, %v1310_v16  ;;  %v1313_v36 = vadd.f32 %v2750_v45, %v1189_v58 }
 0x16b   : > { %v3854_v1 = vpop.f32.mrf.mxu1  ;;  %v3858_v39 = vpop.f32.mrf.mxu0 }
 0x16c   : > { %v3856_v43 = vadd.f32 %v2768_v59, %v1313_v36 }
 0x16d   : > { %v2753_v3 = vpop.f32.mrf.mxu1  ;;  %v3860_v9 = vpop.f32.mrf.mxu0 }
 0x16e   : > { %v1316_v56 = vadd.f32 %v2753_v3, %v1192_v37 }
 0x16f   : > { %v3862_v11 = vpop.f32.mrf.mxu1  ;;  %v3866_v14 = vpop.f32.mrf.mxu0 }
 0x170   : > { %v3864_v63 = vadd.f32 %v2771_v35, %v1316_v56 }
 0x171   : > { %v3868_v22 = vpop.f32.mrf.mxu1  ;;  %v2795_v58 = vpop.f32.mrf.mxu0 }
 0x173   : > { %v3870_v24 = vpop.f32.mrf.mxu1  ;;  %v1639_v30 = vpop.f32.mrf.mxu0 }
 0x175   : > { %v2777_v29 = vpop.f32.mrf.mxu1  ;;  %v2796_v61 = vpop.f32.mrf.mxu0 }
 0x176   : > { %v1580_v55 = vadd.f32 %v2777_v29, %v3832_v13  ;;  %v3916_v29 = vld [vmem:[%s4108_s2] ss:$0 sm:$0xff] }
 0x177   : > { %v1515_v33 = vpop.f32.mrf.mxu1  ;;  %v1642_v49 = vpop.f32.mrf.mxu0 }
 0x178   : > { %v1578_v59 = vadd.f32 %v1515_v33, %v3834_v19  ;;  %v1704_v45 = vadd.f32 %v2795_v58, %v1580_v55 }
 0x179   : > { %v2778_v21 = vpop.f32.mrf.mxu1  ;;  %v2799_v37 = vpop.f32.mrf.mxu0 }
 0x17a   : > { %v1581_v36 = vadd.f32 %v2778_v21, %v3836_v47  ;;  %v1702_v56 = vadd.f32 %v1639_v30, %v1578_v59 }
 0x17b   : > { %v1518_v34 = vpop.f32.mrf.mxu1  ;;  %v3872_v42 = vpop.f32.mrf.mxu0 }
 0x17c   : > { %v1705_v33 = vadd.f32 %v2796_v61, %v1581_v36 }
 0x17d   : > { %v2781_v26 = vpop.f32.mrf.mxu1  ;;  %v3874_v17 = vpop.f32.mrf.mxu0 }
 0x17e   : > { %v1584_v13 = vadd.f32 %v2781_v26, %v3840_v20 }
 0x17f   : > { %v1531_v10 = vpop.f32.mrf.mxu1  ;;  %v3876_v18 = vpop.f32.mrf.mxu0 }
 0x180   : > { %v1582_v20 = vadd.f32 %v1531_v10, %v3842_v38  ;;  %v1311_v38 = vadd.f32 %v3854_v1, %v3823_v4 }
 0x181   : > { %v2782_v40 = vpop.f32.mrf.mxu1  ;;  %v3878_v44 = vpop.f32.mrf.mxu0 }
 0x183   : > { %v1534_v23 = vpop.f32.mrf.mxu1  ;;  %v3880_v5 = vpop.f32.mrf.mxu0 }
 0x185   : > { %v2785_v48 = vpop.f32.mrf.mxu1  ;;  %v3882_v25 = vpop.f32.mrf.mxu0 }
 0x187   : > { %v3884_v41 = vpop.f32.mrf.mxu1  ;;  %v3886_v52 = vpop.f32.mrf.mxu0 }
 0x188   : > { %v1586_v4 = vadd.f32 %v3884_v41, %v3852_v28  ;;  %v1317_v28 = vadd.f32 %v3868_v22, %v3827_v32 }
 0x189   : > { %v3888_v7 = vpop.f32.mrf.mxu1  ;;  %v3890_v54 = vpop.f32.mrf.mxu0 }
 0x18a   : > { %4140 = vst [vmem:[#allocation16_spill] sm:$0xff] %v3890_v54 }
 0x18b   : > { %v3892_v60 = vpop.f32.mrf.mxu1  ;;  %v3894_v8 = vpop.f32.mrf.mxu0 }
 0x18c   : > { %4141 = vst [vmem:[#allocation17_spill] sm:$0xff] %v3894_v8 }
 0x18d   : > { %v3896_v53 = vpop.f32.mrf.mxu1  ;;  %v3898_v0 = vpop.f32.mrf.mxu0 }
 0x18e   : > { %4142 = vst [vmem:[#allocation18_spill] sm:$0xff] %v3898_v0  ;;  %v1579_v0 = vadd.f32 %v1518_v34, %v3838_v62  ;;  %v1592_v32 = vadd.f32 %v3896_v53, %v3864_v63 }
 0x18f   : > { %v3900_v46 = vpop.f32.mrf.mxu1  ;;  %v3903_v12 = vpop.f32.mrf.mxu0 }
 0x190   : > { %4143 = vst [vmem:[#allocation19_spill] sm:$0xff] %v3903_v12  ;;  %v1703_v21 = vadd.f32 %v1642_v49, %v1579_v0 }
 0x191   : > { %v3905_v51 = vpop.f32.mrf.mxu1  ;;  %v2831_v15 = vpop.f32.mrf.mxu0 }
 0x192   : > { %4144 = vst [vmem:[#allocation20_spill] sm:$0xff] %v3905_v51 }
 0x193   : > { %v3908_v16 = vpop.f32.mrf.mxu1  ;;  %v1915_v35 = vpop.f32.mrf.mxu0 }
 0x194   : > { %4145 = vst [vmem:[#allocation21_spill] sm:$0xff] %v3908_v16 }
 0x195   : > { %v2813_v3 = vpop.f32.mrf.mxu1  ;;  %v2832_v54 = vpop.f32.mrf.mxu0 }
 0x196   : > { %v1850_v8 = vadd.f32 %v2813_v3, %v1704_v45  ;;  %v1708_v45 = vadd.f32 %v2799_v37, %v1584_v13  ;;  %v1585_v3 = vadd.f32 %v2782_v40, %v3844_v2  ;;  %v1706_v2 = vadd.f32 %v3872_v42, %v1582_v20 }
 0x197   : > { %v1785_v19 = vpop.f32.mrf.mxu1  ;;  %v1918_v55 = vpop.f32.mrf.mxu0 }
 0x198   : > { %v1980_v12 = vadd.f32 %v2831_v15, %v1850_v8  ;;  %v1848_v58 = vadd.f32 %v1785_v19, %v1702_v56  ;;  %v1583_v15 = vadd.f32 %v1534_v23, %v3846_v57  ;;  %v1709_v40 = vadd.f32 %v3874_v17, %v1585_v3 }
 0x199   : > { %v2814_v47 = vpop.f32.mrf.mxu1  ;;  %v2835_v34 = vpop.f32.mrf.mxu0 }
 0x19a   : > { %v2003_v30 = vadd.f32 %v3916_v29, %v1980_v12  ;;  %v1978_v59 = vadd.f32 %v1915_v35, %v1848_v58  ;;  %v1851_v62 = vadd.f32 %v2814_v47, %v1705_v33 }
 0x19b   : > { %v1788_v26 = vpop.f32.mrf.mxu1  ;;  %v1931_v8 = vpop.f32.mrf.mxu0 }
 0x19c   : > { %v2001_v16 = vadd.f32 %v3916_v29, %v1978_v59  ;;  %v1981_v51 = vadd.f32 %v2832_v54, %v1851_v62  ;;  %v1849_v61 = vadd.f32 %v1788_v26, %v1703_v21  ;;  %v2019_v36 = vmax.f32 %v2003_v30, 0.0 }
 0x19d   : > { %v2817_v49 = vpop.f32.mrf.mxu1  ;;  %v2836_v37 = vpop.f32.mrf.mxu0  ;;  %v1588_v54 = vadd.f32 %v2785_v48, %v3848_v6  ;;  %v1457_v6 = vadd.f32 %v3850_v50, %v1311_v38  ;;  %v1589_v48 = vadd.f32 %v3888_v7, %v3856_v43  ;;  %v1315_v43 = vadd.f32 %v3870_v24, %v3830_v31 }
 0x19e   : > { %v2017_v0 = vmax.f32 %v2001_v16, 0.0  ;;  %v2004_v12 = vadd.f32 %v3916_v29, %v1981_v51  ;;  %v1979_v35 = vadd.f32 %v1918_v55, %v1849_v61  ;;  %v1854_v56 = vadd.f32 %v2817_v49, %v1708_v45 }
 0x19f   : > { %v1801_v10 = vpop.f32.mrf.mxu1  ;;  %v1934_v23 = vpop.f32.mrf.mxu0  ;;  %v1314_v51 = vadd.f32 %v3862_v11, %v3825_v27  ;;  %v1707_v16 = vadd.f32 %v3876_v18, %v1583_v15  ;;  %v1712_v27 = vadd.f32 %v3878_v44, %v1588_v54  ;;  %v1710_v7 = vadd.f32 %v3880_v5, %v1586_v4 }
 0x1a0   : > { %v2034_v13 = vadd.f32 %v2019_v36, %v2017_v0  ;;  %v2002_v57 = vadd.f32 %v3916_v29, %v1979_v35  ;;  %v1984_v19 = vadd.f32 %v2835_v34, %v1854_v56  ;;  %v1852_v33 = vadd.f32 %v1801_v10, %v1706_v2  ;;  %v4147_v2 = vld [vmem:[#allocation20_spill] sm:$0xff] }
 0x1a1   : > { %v2818_v58 = vpop.f32.mrf.mxu1  ;;  %v2020_v1 = vmax.f32 %v2004_v12, 0.0  ;;  %v2839_v55 = vpop.f32.mrf.mxu0  ;;  %v1460_v62 = vadd.f32 %v3858_v39, %v1314_v51  ;;  %v1713_v26 = vadd.f32 %v3882_v25, %v1589_v48  ;;  %v1587_v39 = vadd.f32 %v3892_v60, %v1457_v6 }
 0x1a2   : > { %v2018_v42 = vmax.f32 %v2002_v57, 0.0  ;;  %v1855_v17 = vadd.f32 %v2818_v58, %v1709_v40  ;;  %v1982_v47 = vadd.f32 %v1931_v8, %v1852_v33  ;;  %v2007_v41 = vadd.f32 %v3916_v29, %v1984_v19  ;;  %v4149_v58 = vld [vmem:[#allocation21_spill] sm:$0xff] }
 0x1a3   : > { %v1804_v21 = vpop.f32.mrf.mxu1  ;;  %v1947_v59 = vpop.f32.mrf.mxu0  ;;  %v1463_v5 = vadd.f32 %v3860_v9, %v1317_v28  ;;  %v1590_v36 = vadd.f32 %v3900_v46, %v1460_v62  ;;  %v1461_v60 = vadd.f32 %v3866_v14, %v1315_v43  ;;  %v1711_v56 = vadd.f32 %v3886_v52, %v1587_v39  ;;  %v4151_v28 = vld [vmem:[#allocation19_spill] sm:$0xff] }
 0x1a4   : > { %v2041_v11 = vadd.f32 %v2020_v1, %v2018_v42  ;;  %v1985_v18 = vadd.f32 %v2836_v37, %v1855_v17  ;;  %v1853_v30 = vadd.f32 %v1804_v21, %v1707_v16  ;;  %v2005_v50 = vadd.f32 %v3916_v29, %v1982_v47  ;;  %v4146_v37 = vld [vmem:[#allocation16_spill] sm:$0xff]  ;;  %v4150_v17 = vld [vmem:[#allocation18_spill] sm:$0xff] }
 0x1a5   : > { %v2821_v34 = vpop.f32.mrf.mxu1  ;;  %v2840_v20 = vpop.f32.mrf.mxu0  ;;  %v2023_v49 = vmax.f32 %v2007_v41, 0.0  ;;  %v1716_v38 = vadd.f32 %v4146_v37, %v1592_v32  ;;  %v1593_v10 = vadd.f32 %v4147_v2, %v1463_v5  ;;  %v1591_v52 = vadd.f32 %v4149_v58, %v1461_v60  ;;  %v2033_v2 = vld [vmem:[#allocation2] sm:$0x1] }
 0x1a6   : > { %v1983_v44 = vadd.f32 %v1934_v23, %v1853_v30  ;;  %v1858_v45 = vadd.f32 %v2821_v34, %v1712_v27  ;;  %v2021_v22 = vmax.f32 %v2005_v50, 0.0  ;;  %v2008_v61 = vadd.f32 %v3916_v29, %v1985_v18  ;;  %v4148_v23 = vld [vmem:[#allocation17_spill] sm:$0xff] }
 0x1a7   : > { %v1817_v3 = vpop.f32.mrf.mxu1  ;;  %v1950_v24 = vpop.f32.mrf.mxu0  ;;  %v1714_v14 = vadd.f32 %v4148_v23, %v1590_v36  ;;  %v1715_v41 = vadd.f32 %v4151_v28, %v1591_v52 }
 0x1a8   : > { %v2006_v8 = vadd.f32 %v3916_v29, %v1983_v44  ;;  %v1988_v15 = vadd.f32 %v2839_v55, %v1858_v45  ;;  %v1856_v31 = vadd.f32 %v1817_v3, %v1710_v7  ;;  %v2035_v25 = vadd.f32 %v2034_v13, %v2021_v22 }
 0x1a9   : > { %v2822_v0 = vpop.f32.mrf.mxu1  ;;  %v2843_v35 = vpop.f32.mrf.mxu0  ;;  %v2024_v9 = vmax.f32 %v2008_v61, 0.0  ;;  %v1717_v55 = vadd.f32 %v4150_v17, %v1593_v10 }
 0x1aa   : > { %v2022_v12 = vmax.f32 %v2006_v8, 0.0  ;;  %v1986_v63 = vadd.f32 %v1947_v59, %v1856_v31  ;;  %v1859_v53 = vadd.f32 %v2822_v0, %v1713_v26  ;;  %v2036_v40 = vadd.f32 %v2035_v25, %v2023_v49 }
 0x1ab   : > { %v1820_v54 = vpop.f32.mrf.mxu1  ;;  %v2011_v46 = vadd.f32 %v3916_v29, %v1988_v15  ;;  %v1963_v33 = vpop.f32.mrf.mxu0 }
 0x1ac   : > { %v2042_v57 = vadd.f32 %v2041_v11, %v2022_v12  ;;  %v2009_v13 = vadd.f32 %v3916_v29, %v1986_v63  ;;  %v1989_v51 = vadd.f32 %v2840_v20, %v1859_v53  ;;  %v1857_v16 = vadd.f32 %v1820_v54, %v1711_v56 }
 0x1ad   : > { %v2825_v19 = vpop.f32.mrf.mxu1  ;;  %v2027_v47 = vmax.f32 %v2011_v46, 0.0  ;;  %v2844_v62 = vpop.f32.mrf.mxu0 }
 0x1ae   : > { %v2025_v4 = vmax.f32 %v2009_v13, 0.0  ;;  %v2043_v1 = vadd.f32 %v2042_v57, %v2024_v9  ;;  %v1862_v42 = vadd.f32 %v2825_v19, %v1716_v38  ;;  %v1987_v6 = vadd.f32 %v1950_v24, %v1857_v16 }
 0x1af   : > { %v1833_v48 = vpop.f32.mrf.mxu1  ;;  %v2012_v18 = vadd.f32 %v3916_v29, %v1989_v51  ;;  %v1966_v3 = vpop.f32.mrf.mxu0 }
 0x1b0   : > { %v2037_v21 = vadd.f32 %v2036_v40, %v2025_v4  ;;  %v1992_v27 = vadd.f32 %v2843_v35, %v1862_v42  ;;  %v1860_v11 = vadd.f32 %v1833_v48, %v1714_v14  ;;  %v2010_v30 = vadd.f32 %v3916_v29, %v1987_v6 }
 0x1b1   : > { %v2826_v59 = vpop.f32.mrf.mxu1  ;;  %v2028_v32 = vmax.f32 %v2012_v18, 0.0 }
 0x1b2   : > { %v1990_v50 = vadd.f32 %v1963_v33, %v1860_v11  ;;  %v2038_v34 = vadd.f32 %v2037_v21, %v2027_v47  ;;  %v1863_v43 = vadd.f32 %v2826_v59, %v1717_v55  ;;  %v2026_v7 = vmax.f32 %v2010_v30, 0.0 }
 0x1b3   : > { %v1836_v44 = vpop.f32.mrf.mxu1  ;;  %v2015_v45 = vadd.f32 %v3916_v29, %v1992_v27 }
 0x1b4   : > { %v2013_v20 = vadd.f32 %v3916_v29, %v1990_v50  ;;  %v1993_v26 = vadd.f32 %v2844_v62, %v1863_v43  ;;  %v1861_v39 = vadd.f32 %v1836_v44, %v1715_v41  ;;  %v2044_v22 = vadd.f32 %v2043_v1, %v2026_v7 }
 0x1b5   : > { %v2031_v31 = vmax.f32 %v2015_v45, 0.0 }
 0x1b6   : > { %v2029_v61 = vmax.f32 %v2013_v20, 0.0  ;;  %v1991_v8 = vadd.f32 %v1966_v3, %v1861_v39  ;;  %v2045_v15 = vadd.f32 %v2044_v22, %v2028_v32  ;;  %v2016_v5 = vadd.f32 %v3916_v29, %v1993_v26 }
 0x1b8   : > { %v2039_v24 = vadd.f32 %v2038_v34, %v2029_v61  ;;  %v2014_v36 = vadd.f32 %v3916_v29, %v1991_v8  ;;  %v2032_v0 = vmax.f32 %v2016_v5, 0.0 }
 0x1ba   : > { %v2040_v49 = vadd.f32 %v2039_v24, %v2031_v31  ;;  %v2030_v25 = vmax.f32 %v2014_v36, 0.0 }
 0x1bc   : > { %v2046_v60 = vadd.f32 %v2045_v15, %v2030_v25 }
 0x1be   : > { %v2047_v12 = vadd.f32 %v2046_v60, %v2032_v0 }
 0x1c0   : > { %v2048_v63 = vadd.f32 %v2047_v12, %v2040_v49 }
 0x1c2   : > { %v2049_v53 = vrot.slane %v2048_v63, 4 }
 0x1c4   : > { %v2050_v35 = vadd.f32 %v2049_v53, %v2048_v63 }
 0x1c6   : > { %v2051_v56 = vrot.slane %v2050_v35, 2 }
 0x1c8   : > { %v2052_v37 = vadd.f32 %v2051_v56, %v2050_v35 }
 0x1ca   : > { %v2053_v38 = vrot.slane %v2052_v37, 1 }
 0x1cc   : > { %v2054_v10 = vadd.f32 %v2053_v38, %v2052_v37  ;;  %2060 = sbr.rel (%p2563_p11) target bundleno = 861 (0x35d), region = 68 }
 0x1ce   : > { %v2055_v40 = vadd.f32 %v2054_v10, %v2033_v2 }
 0x1d0   : > { %2056 = vst [vmem:[#allocation2] sm:$0x1] %v2055_v40 }
 0x1d1   : > { %v2999_v29 = vld [vmem:[%s4109_s3 + $0x38] sm:$0xff]   ;;  %v3162_v54 = vmov 0.0   ;;  %v3000_v9 = vld [vmem:[%s4109_s3 + $0x30] sm:$0xff]   ;;  %vm3163_vm8 = vmmov 0   ;;  %v3001_v57 = vld [vmem:[%s4109_s3 + $0x28] sm:$0xff]   ;;  %vm2065_vm9 = vcmask 1040384   ;;  %v2178_v28 = vstv %s3317_s11 }
 0x1d2   : > { %2845 = vmatprep.subr.bf16.mxu0 %v3162_v54  ;;  %2865 = vmatprep.subr.bf16.mxu1 %v3162_v54  ;;  %v3007_v23 = vld [vmem:[%s4112_s6 + $0x38] sm:$0xff]   ;;  %v3002_v14 = vld [vmem:[%s4109_s3 + $0x20] sm:$0xff]   ;;  %v3008_v16 = vld [vmem:[%s4112_s6 + $0x30] sm:$0xff]   ;;  %v2187_v61 = vstv %s3319_s28  ;;  %v3164_v36 = vmov -1.0  }
 0x1d3   : > { %2846 = vmatpush3.bf16.msra.mxu0 %v2999_v29  ;;  %2861 = vmatprep.mubr.msk.bf16.mxu0 %vm3163_vm8, %v3162_v54  ;;  %v3003_v33 = vld [vmem:[%s4109_s3 + $0x18] sm:$0xff]   ;;  %v3009_v58 = vld [vmem:[%s4112_s6 + $0x28] sm:$0xff]   ;;  %v3004_v52 = vld [vmem:[%s4109_s3 + $0x10] sm:$0xff]  }
 0x1d4   : > { %2847 = vmatprep.subr.bf16.mxu0 %v3162_v54  ;;  %2881 = vmatprep.mubr.msk.bf16.mxu1 %vm3163_vm8, %v3162_v54  ;;  %v3010_v4 = vld [vmem:[%s4112_s6 + $0x20] sm:$0xff]   ;;  %v3005_v1 = vld [vmem:[%s4109_s3 + $0x8] sm:$0xff]   ;;  %v3011_v42 = vld [vmem:[%s4112_s6 + $0x18] sm:$0xff]  }
 0x1d5   : > { %2866 = vmatpush3.bf16.msra.mxu1 %v3007_v23  ;;  %v3006_v17 = vld [vmem:[%s4109_s3] sm:$0xff]   ;;  %v3012_v55 = vld [vmem:[%s4112_s6 + $0x10] sm:$0xff]   ;;  %v3013_v48 = vld [vmem:[%s4112_s6 + $0x8] sm:$0xff]  }
 0x1d6   : > { %2867 = vmatprep.subr.bf16.mxu1 %v3162_v54  ;;  %v3014_v47 = vld [vmem:[%s4112_s6] sm:$0xff]  }
 0x1d7   : > { %2848 = vmatpush3.bf16.msra.mxu0 %v3000_v9  ;;  %v2061_v46 = vld [vmem:[#allocation2] sm:$0x1] }
 0x1d8   : > { %2849 = vmatprep.subr.bf16.mxu0 %v3162_v54  ;;  %v2062_v13 = vmul.f32 0.00390625, %v2061_v46  ;;  %v2173_v21 = vld [vmem:[%s4110_s4] sm:$0x1] }
 0x1d9   : > { %2868 = vmatpush3.bf16.msra.mxu1 %v3008_v16  ;;  %v2182_v39 = vld [vmem:[%s4111_s5] sm:$0x1] }
 0x1da   : > { %v2064_v51 = vmul.f32 %v2062_v13, %v2062_v13  ;;  %2869 = vmatprep.subr.bf16.mxu1 %v3162_v54  ;;  %v2063_v6 = vpack.c.bf16 %v2062_v13, %v2062_v13  ;;  %v2206_v8 = vld [vmem:[%s4113_s7] sm:$0x1] }
 0x1db   : > { %2850 = vmatpush3.bf16.msra.mxu0 %v3001_v57 }
 0x1dc   : > { %2851 = vmatprep.subr.bf16.mxu0 %v3162_v54  ;;  %v2066_v19 = vsel %vm2065_vm9, %v2064_v51, 0.0 }
 0x1dd   : > { %2067 = vadd.xlane.f32.xlu0 %v2066_v19  ;;  %2870 = vmatpush3.bf16.msra.mxu1 %v3009_v58 }
 0x1de   : > { %2871 = vmatprep.subr.bf16.mxu1 %v3162_v54 }
 0x1df   : > { %2852 = vmatpush3.bf16.msra.mxu0 %v3002_v14 }
 0x1e0   : > { %2853 = vmatprep.subr.bf16.mxu0 %v3162_v54 }
 0x1e1   : > { %2872 = vmatpush3.bf16.msra.mxu1 %v3010_v4 }
 0x1e2   : > { %2873 = vmatprep.subr.bf16.mxu1 %v3162_v54 }
 0x1e3   : > { %2854 = vmatpush3.bf16.msra.mxu0 %v3003_v33 }
 0x1e4   : > { %2855 = vmatprep.subr.bf16.mxu0 %v3162_v54 }
 0x1e5   : > { %2874 = vmatpush3.bf16.msra.mxu1 %v3011_v42 }
 0x1e6   : > { %2875 = vmatprep.subr.bf16.mxu1 %v3162_v54 }
 0x1e7   : > { %2856 = vmatpush3.bf16.msra.mxu0 %v3004_v52 }
 0x1e8   : > { %2857 = vmatprep.subr.bf16.mxu0 %v3162_v54 }
 0x1e9   : > { %2876 = vmatpush3.bf16.msra.mxu1 %v3012_v55 }
 0x1ea   : > { %2877 = vmatprep.subr.bf16.mxu1 %v3162_v54 }
 0x1eb   : > { %2858 = vmatpush3.bf16.msra.mxu0 %v3005_v1 }
 0x1ec   : > { %2859 = vmatprep.subr.bf16.mxu0 %v3162_v54 }
 0x1ed   : > { %2878 = vmatpush3.bf16.msra.mxu1 %v3013_v48 }
 0x1ee   : > { %2879 = vmatprep.subr.bf16.mxu1 %v3162_v54 }
 0x1ef   : > { %2860 = vmatpush3.bf16.msra.mxu0 %v3006_v17 }
 0x1f1   : > { %2880 = vmatpush3.bf16.msra.mxu1 %v3014_v47 }
 0x1f2   : > { %2862 = vmatmul.mubr.bf16.vlgmr.msra.gmra.mxu0 %v2063_v6 }
 0x1f4   : > { %2882 = vmatmul.mubr.bf16.vlgmr.msra.gmra.mxu1 %v2063_v6 }
 0x266   : > { %v2068_v27 = vpop.xlane.xlu0 %2067 }
 0x267   : > { %v2174_v11 = vadd.f32 %v2173_v21, %v2068_v27 }
 0x2b2   : > { %v2167_v18 = vpop.f32.mrf.mxu0 }
 0x2b3   : > { %v2175_v30 = vmul.f32 2.0, %v2167_v18 }
 0x2b4   : > { %v2863_v59 = vpop.f32.mrf.mxu0  ;;  %v2289_v44 = vpop.f32.mrf.mxu1 }
 0x2b5   : > { %v2176_v62 = vsub.f32 %v2174_v11, %v2175_v30  ;;  %v2290_v24 = vadd.f32 %v2289_v44, %v2206_v8 }
 0x2b6   : > { %v2170_v41 = vpop.f32.mrf.mxu0  ;;  %v2883_v45 = vpop.f32.mrf.mxu1 }
 0x2b7   : > { %v2177_v50 = vmax.f32 %v2176_v62, 0.0 }
 0x2b8   : > { %v2864_v34 = vpop.f32.mrf.mxu0  ;;  %v2292_v20 = vpop.f32.mrf.mxu1 }
 0x2b9   : > { %v2179_v43 = vmul.f32 %v2178_v28, %v2177_v50 }
 0x2ba   : > { %v2884_v26 = vpop.f32.mrf.mxu1 }
 0x2bb   : > { %v2180_v7 = vmul.f32 1.442695, %v2179_v43 }
 0x2bd   : > { %3015 = vpow2.f32 %v2180_v7 }
 0x2ca   : > { %v3016_v32 = vpop.eup %3015 }
 0x2cb   : > { %v2183_v22 = vmul.f32 %v3016_v32, %v2182_v39 }
 0x2cd   : > { %v2184_v3 = vsel %vm2065_vm9, %v2183_v22, 0.0 }
 0x2ce   : > { %2185 = vadd.xlane.f32.xlu0 %v2184_v3 }
 0x357   : > { %v2186_v15 = vpop.xlane.xlu0 %2185 }
 0x358   : > { %v2188_v31 = vsub.f32 %v2186_v15, %v2187_v61 }
 0x35a   : > { %vm2189_vm10 = vcmp.gt.f32.partialorder %v2188_v31, 0.0 }
 0x35b   : > { %v2297_v5 = vsel %vm2189_vm10, %v2290_v24, 0.0  ;;  %v2298_v49 = vsel %vm2189_vm10, 1.0, %v3164_v36 }
 0x35c   : > { %2299 = vst [vmem:[%s391_s8] sm:$0x1] %v2297_v5  ;;  %2300 = vst [vmem:[%s4120_s24] sm:$0x1] %v2298_v49 }
 0x35d PF: > { %s4121_s28 = sshll.u32 %s3146_s17, 4  ;;  %s2318_s18 = sshll.u32 %s391_s8, 4  ;;  %s2319_s18 = int_to_ptr.vmem [resolvable:$true] %s2318_s18 }
 0x35e   : > { %s2316_s30 = scalar_lea.hbm %s4115_s9, %s4121_s28  ;;  %s2302_s19 = scalar_lea.sflag [#allocation4], %s3313_s25 }
 0x35f   : > { %s3032_s29 = scalar_lea.vmem %s2319_s18, 16  ;;  %s3165_s12 = smov [#allocation6]  }
 0x360   : > { %p3033_p12 = scmp.ne.s32.totalorder %s2319_s18, %s3032_s29  ;;  %s3036_s11 = sshll.u32 %s3165_s12, 4  ;;  %s3037_s11 = int_to_ptr.vmem [resolvable:$false] %s3036_s11 }
 0x361   : > { %s3038_s22 = scalar_lea.vmem %s3037_s11, 32  ;;  %p3039_p1 = scmp.lt.s32.totalorder %s2319_s18, %s3037_s11 }
 0x362   : > { %p3034_p13 = pnand %p3033_p12, %p3272_p3  ;;  %p3040_p2 = scmp.lt.s32.totalorder %s3038_s22, %s3032_s29 }
 0x364   : > { %p3035_p0 = pneg %p3034_p13  ;;  %p3041_p4 = por %p3040_p2, %p3039_p1 }
 0x366   : > { %p3042_p5 = pnand %p3041_p4, %p3035_p0 }
 0x368   : > { %3045 = shalt.err (!%p3042_p5)
}
 0x369   : > { %s3046_s16 = scalar_lea.hbm %s2316_s30, 16  ;;  %s3050_s24 = scalar_lea.hbm %s4115_s9, 32 }
 0x36a   : > { %p3047_p6 = scmp.ne.s32.totalorder %s2316_s30, %s3046_s16  ;;  %p3051_p9 = scmp.lt.s32.totalorder %s2316_s30, %s4115_s9 }
 0x36b   : > { %p3052_p10 = scmp.lt.s32.totalorder %s3050_s24, %s3046_s16 }
 0x36c   : > { %p3048_p7 = pnand %p3047_p6, %p3272_p3 }
 0x36d   : > { %p3053_p11 = por %p3052_p10, %p3051_p9 }
 0x36e   : > { %p3049_p8 = pneg %p3048_p7 }
 0x370   : > { %p3054_p12 = pnand %p3053_p11, %p3049_p8 }
 0x372   : > { %3057 = shalt.err (!%p3054_p12)
}
 0x373   : > { %2902 = dma.vmem_to_hbm [thread:$0]  (%p3272_p3), %s2319_s18, 16, %s2316_s30, %s2302_s19  }
 0x374   : > { %s4152_s29 = sshll.u32 %s3146_s17, 4  ;;  %s4153_s8 = scalar_lea.vmem [#allocation7], %s3313_s25 }
 0x375   : > { %s2329_s22 = scalar_lea.hbm %s4116_s10, %s4152_s29  ;;  %s2331_s21 = sshll.u32 %s4153_s8, 4  ;;  %s2332_s21 = int_to_ptr.vmem [resolvable:$true] %s2331_s21 }
 0x376   : > { %s2306_s0 = scalar_lea.sflag [#allocation8], %s3313_s25  ;;  %s3058_s24 = scalar_lea.vmem %s2332_s21, 16 }
 0x377   : > { %p3059_p13 = scmp.ne.s32.totalorder %s2332_s21, %s3058_s24  ;;  %s3166_s28 = smov [#allocation7]  }
 0x378   : > { %s3062_s16 = sshll.u32 %s3166_s28, 4  ;;  %s3063_s16 = int_to_ptr.vmem [resolvable:$false] %s3062_s16 }
 0x379   : > { %p3060_p0 = pnand %p3059_p13, %p3272_p3  ;;  %s3064_s1 = scalar_lea.vmem %s3063_s16, 32 }
 0x37a   : > { %p3065_p2 = scmp.lt.s32.totalorder %s2332_s21, %s3063_s16  ;;  %p3066_p4 = scmp.lt.s32.totalorder %s3064_s1, %s3058_s24 }
 0x37b   : > { %p3061_p1 = pneg %p3060_p0 }
 0x37c   : > { %p3067_p5 = por %p3066_p4, %p3065_p2 }
 0x37e   : > { %p3068_p6 = pnand %p3067_p5, %p3061_p1 }
 0x380   : > { %3071 = shalt.err (!%p3068_p6)
}
 0x381   : > { %s3072_s17 = scalar_lea.hbm %s2329_s22, 16  ;;  %s3076_s18 = scalar_lea.hbm %s4116_s10, 32 }
 0x382   : > { %p3073_p7 = scmp.ne.s32.totalorder %s2329_s22, %s3072_s17  ;;  %p3077_p10 = scmp.lt.s32.totalorder %s2329_s22, %s4116_s10 }
 0x383   : > { %p3078_p11 = scmp.lt.s32.totalorder %s3076_s18, %s3072_s17 }
 0x384   : > { %p3074_p8 = pnand %p3073_p7, %p3272_p3 }
 0x385   : > { %p3079_p12 = por %p3078_p11, %p3077_p10 }
 0x386   : > { %p3075_p9 = pneg %p3074_p8 }
 0x388   : > { %p3080_p13 = pnand %p3079_p12, %p3075_p9 }
 0x38a   : > { %3083 = shalt.err (!%p3080_p13)
}
 0x38b   : > { %2903 = dma.vmem_to_hbm [thread:$0]  (%p3272_p3), %s2332_s21, 16, %s2329_s22, %s2306_s0  }
 0x38c PF: > { %p2919_p0 = scmp.ge.s32.totalorder %s3158_s20, 2  ;;  %s2343_s1 = sand.u32 1, %s3130_s13  }
 0x38d   : > { %p4154_p1 = scmp.ne.s32.totalorder %s4130_s27, 0  ;;  %s2344_s12 = scalar_lea.sflag [#allocation4], %s2343_s1 }
 0x38f   : > { %p2911_p2 = pnand %p2919_p0, %p4154_p1 }
 0x391   : > { %p2912_p4 = pneg %p2911_p2 }
 0x393   : > { %3121 = dma.done.wait (%p2912_p4), %s2344_s12, 16  }
 0x394   : > { %3123 = vsyncadd (%p2912_p4), %s2344_s12, 4294967280  ;;  %s2352_s11 = scalar_lea.sflag [#allocation8], %s2343_s1 }
 0x395   : > { %3125 = dma.done.wait (%p2912_p4), %s2352_s11, 16  }
 0x396   : > { %3127 = vsyncadd (%p2912_p4), %s2352_s11, 4294967280  ;;  %s28_s20 = sadd.s32 1, %s3158_s20   ;;  %s4155_s16 = sld [smem:[#allocation12_spill]] }
 0x397   : > { %p25_p5 = scmp.ge.s32.totalorder %s28_s20, 6   ;;  %s4156_s17 = sld [smem:[#allocation13_spill]] }
 0x398   : > { %s4157_s18 = sld [smem:[#allocation14_spill]]  ;;  %s4159_s13 = smov %s3134_s14 }
 0x399   : > { %s4158_s19 = sld [smem:[#allocation15_spill]]  ;;  %s4160_s14 = smov %s3138_s15 }
 0x39a   : > { %s4161_s15 = smov %s3302_s23  ;;  %27 = sbr.rel (!%p25_p5) target bundleno = 12 (0xc), region = 121 }
 0x39f   :  { %2356 = vsyncpa [#allocation4], 1 }
 0x3a0   :  { %2358 = vsyncpa [#allocation4 + $0x1], 1 }
 0x3a1   :  { %2359 = vsyncpa [#allocation8], 1 }
 0x3a2   :  { %2361 = vsyncpa [#allocation8 + $0x1], 1 }
 0x3a3   :  { %2362 = vsyncpa [#allocation5], 1 }
 0x3a4   :  { %2364 = vsyncpa [#allocation5 + $0x1], 1 }

</bundles_post_ra>
